<compile_context>
chip_gen: v7x
topology: tpu7x:2x2x1
jax: 0.10.0
libtpu: 0.0.40
codegen_flags: <defaults>
</compile_context>

<pallas_src>
import functools

import numpy as np

import jax
import jax.numpy as jnp
from jax import lax
from jax.experimental import pallas as pl
from jax.experimental.pallas import tpu as pltpu


# ----------------------------- fused Pallas kernel --------------------------------


def _octave_kernel(x_ref, whh_ref, wlow_ref, sel_ref, pool_ref, up_ref,
                   out_ref,
                   xhp_ref, xlp_ref, xh2lp_ref, colh_ref, coll_ref,
                   *, bb, hx, lx, hy, ly, H, W, Hl, Wl):
    f32, bf16 = jnp.float32, jnp.bfloat16
    HW, HWl = H * W, Hl * Wl
    pad_h, pad_l = W + 1, Wl + 1

    # Zero only the halo lanes of the padded scratches; the interior is fully
    # rewritten for every image below.  Done every grid step (scratch is per
    # TensorCore and the batch axis is "parallel", so no reliable "first" step).
    xhp_ref[:, :pad_h] = jnp.zeros((hx, pad_h), f32)
    xhp_ref[:, pad_h + HW:pad_h + HW + pad_h] = jnp.zeros((hx, pad_h), f32)
    xlp_ref[:, :pad_l] = jnp.zeros((lx, pad_l), f32)
    xlp_ref[:, pad_l + HWl:pad_l + HWl + pad_l] = jnp.zeros((lx, pad_l), f32)
    xh2lp_ref[:, :pad_l] = jnp.zeros((hx, pad_l), f32)
    xh2lp_ref[:, pad_l + HWl:pad_l + HWl + pad_l] = jnp.zeros((hx, pad_l), f32)

    # Column-border masks, generated in-kernel (no HBM inputs for them).
    col_h = lax.broadcasted_iota(jnp.int32, (1, HW), 1) % W
    col_l = lax.broadcasted_iota(jnp.int32, (1, HWl), 1) % Wl
    mh = (col_h >= 1, None, col_h <= W - 2)      # indexed by dw + 1
    ml = (col_l >= 1, None, col_l <= Wl - 2)

    for b in range(bb):
        xb = x_ref[b]                                     # (Cin, HW) bf16
        xh = xb[:hx, :]
        # nearest 0.5x subsample and 2x2 avg-pool as in-VMEM matmuls (no extra
        # XLA/HBM passes over x).
        xl = jnp.dot(xb[hx:, :], sel_ref[...], preferred_element_type=f32)
        xh2l = jnp.dot(xh, pool_ref[...], preferred_element_type=f32)

        xhp_ref[:, pad_h:pad_h + HW] = xh.astype(f32)
        xlp_ref[:, pad_l:pad_l + HWl] = xl
        xh2lp_ref[:, pad_l:pad_l + HWl] = xh2l

        # im2col build: every shifted + masked tap slice is computed exactly once
        # and consumed by a single K=9*Cin matmul below.  Mask/select math in f32
        # (v5e-friendly); the cast to bf16 happens at the col store.
        t = 0
        for dh in (-1, 0, 1):
            for dw in (-1, 0, 1):
                dfh, dfl = dh * W + dw, dh * Wl + dw
                sh = xhp_ref[:, pad_h + dfh:pad_h + dfh + HW]
                sl = xlp_ref[:, pad_l + dfl:pad_l + dfl + HWl]
                sp = xh2lp_ref[:, pad_l + dfl:pad_l + dfl + HWl]
                if dw != 0:
                    sh = jnp.where(mh[dw + 1], sh, jnp.zeros_like(sh))
                    sl = jnp.where(ml[dw + 1], sl, jnp.zeros_like(sl))
                    sp = jnp.where(ml[dw + 1], sp, jnp.zeros_like(sp))
                colh_ref[t * hx:(t + 1) * hx, b * HW:(b + 1) * HW] = sh.astype(bf16)
                coll_ref[t * lx:(t + 1) * lx, b * HWl:(b + 1) * HWl] = sl.astype(bf16)
                coll_ref[9 * lx + t * hx:9 * lx + (t + 1) * hx,
                         b * HWl:(b + 1) * HWl] = sp.astype(bf16)
                t += 1

    # Two MXU matmuls cover all four 3x3 convolutions; the stacked low weight block
    # also fuses the X_l2l + X_h2l add into the f32 accumulation.
    acc_h = jnp.dot(whh_ref[...], colh_ref[...],
                    preferred_element_type=f32)           # (hy,   bb*HW)
    acc_l = jnp.dot(wlow_ref[...], coll_ref[...],
                    preferred_element_type=f32)           # (Cout, bb*HWl)

    # Nearest-2x upsample via the one-hot matmul (stays in VMEM), fuse the residual
    # add and write the channel-concatenated result with ONE store per image.
    for b in range(bb):
        low_b = acc_l[:, b * HWl:(b + 1) * HWl].astype(bf16)
        up_b = jnp.dot(low_b, up_ref[...], preferred_element_type=f32)  # (Cout, HW)
        hi_b = acc_h[:, b * HW:(b + 1) * HW] + up_b[:hy, :]
        out_ref[b, :, :] = jnp.concatenate([hi_b, up_b[hy:, :]],
                                           axis=0).astype(out_ref.dtype)


# ----------------------------- wrapper ---------------------------------------------


def octave_conv_v1(x, weights, alpha_in=0.5, alpha_out=0.5, batch_block=None):
    """Matches OctaveConv_v1.forward with stride=1, padding=1, bias=False."""
    N, Cin, H, W = x.shape
    Cout = weights.shape[0]
    assert weights.shape[1] == Cin and weights.shape[2:] == (3, 3)
    assert H % 2 == 0 and W % 2 == 0
    end_h_x = int(Cin * (1 - alpha_in))
    end_h_y = int(Cout * (1 - alpha_out))
    ch = -(-Cin // 2)                       # torch.chunk(x, 2, 1): first-half size
    assert ch == end_h_x, "torch.chunk split must equal int(Cin*(1-alpha_in))"
    hx, lx = end_h_x, Cin - end_h_x
    hy, ly = end_h_y, Cout - end_h_y
    assert min(hx, lx, hy, ly) > 0
    Hl, Wl = H // 2, W // 2
    HW, HWl = H * W, Hl * Wl

    if batch_block is None:
        batch_block = 1
        # amortise per-grid-step overhead, but keep the grid even so both v7x
        # TensorCores get work.
        for cand in (8, 4, 2):
            if N % cand == 0 and (N // cand) % 2 == 0:
                batch_block = cand
                break
    assert N % batch_block == 0
    bb = batch_block

    x_flat = x.reshape(N, Cin, HW).astype(jnp.bfloat16)

    # Weight matrices in im2col layout: column index = (kh*3 + kw)*C + ci.
    def flat_taps(wblk):
        co, ci = wblk.shape[0], wblk.shape[1]
        return jnp.transpose(wblk, (0, 2, 3, 1)).reshape(co, 9 * ci)

    wf = weights.astype(jnp.float32)
    w_hh = flat_taps(wf[:hy, :hx])                                    # (hy, 9*hx)
    w_lh = flat_taps(wf[:hy, hx:])                                    # (hy, 9*lx)
    w_ll = flat_taps(wf[hy:, hx:])                                    # (ly, 9*lx)
    w_hl = flat_taps(wf[hy:, :hx])                                    # (ly, 9*hx)
    # Combined low-path weights: rows [0:hy] -> X_l2h (pre-upsample),
    # rows [hy:] -> X_l2l + X_h2l; columns [0:9*lx] consume col(X_l),
    # columns [9*lx:] consume col(X_h2l).
    w_low = jnp.concatenate([
        jnp.concatenate([w_lh, jnp.zeros((hy, 9 * hx), jnp.float32)], axis=1),
        jnp.concatenate([w_ll, w_hl], axis=1)], axis=0)               # (Cout, 9*Cin)
    w_hh = w_hh.astype(jnp.bfloat16)
    w_low = w_low.astype(jnp.bfloat16)
    # NOTE: bias in the reference module is all zeros (bias=False) -> omitted.

    # Host-side constants (constant-folded at trace time):
    #  sel : nearest 0.5x subsample selection, pool: 2x2 avg-pool, up: nearest 2x.
    jj = np.arange(HWl)
    src_hi = (jj // Wl) * (2 * W) + (jj % Wl) * 2
    sel = np.zeros((HW, HWl), np.float32)
    sel[src_hi, jj] = 1.0
    pool = np.zeros((HW, HWl), np.float32)
    for dh in (0, 1):
        for dw in (0, 1):
            pool[src_hi + dh * W + dw, jj] = 0.25
    ii = np.arange(HW)
    up = np.zeros((HWl, HW), np.float32)
    up[(ii // W // 2) * Wl + (ii % W) // 2, ii] = 1.0

    kern = functools.partial(_octave_kernel, bb=bb, hx=hx, lx=lx, hy=hy, ly=ly,
                             H=H, W=W, Hl=Hl, Wl=Wl)
    const2 = lambda n: (0, 0)

    out_flat = pl.pallas_call(
        kern,
        out_shape=jax.ShapeDtypeStruct((N, Cout, HW), jnp.float32),
        grid=(N // bb,),
        in_specs=[
            pl.BlockSpec((bb, Cin, HW), lambda n: (n, 0, 0)),
            pl.BlockSpec((hy, 9 * hx), const2),
            pl.BlockSpec((Cout, 9 * Cin), const2),
            pl.BlockSpec((HW, HWl), const2),
            pl.BlockSpec((HW, HWl), const2),
            pl.BlockSpec((HWl, HW), const2),
        ],
        out_specs=pl.BlockSpec((bb, Cout, HW), lambda n: (n, 0, 0)),
        scratch_shapes=[
            pltpu.VMEM((hx, HW + 2 * (W + 1)), jnp.float32),      # padded X_h
            pltpu.VMEM((lx, HWl + 2 * (Wl + 1)), jnp.float32),    # padded X_l
            pltpu.VMEM((hx, HWl + 2 * (Wl + 1)), jnp.float32),    # padded X_h2l
            pltpu.VMEM((9 * hx, bb * HW), jnp.bfloat16),          # im2col high
            pltpu.VMEM((9 * Cin, bb * HWl), jnp.bfloat16),        # im2col low (X_l;X_h2l)
        ],
        compiler_params=pltpu.CompilerParams(
            dimension_semantics=("parallel",),      # batch blocks across TCs (v7x)
            vmem_limit_bytes=32 * 1024 * 1024,
        ),
    )(x_flat, w_hh, w_low,
      jnp.asarray(sel, jnp.bfloat16), jnp.asarray(pool, jnp.bfloat16),
      jnp.asarray(up, jnp.bfloat16))

    return out_flat.reshape(N, Cout, H, W)


# ----------------------------- pure-JAX reference (self-check) ---------------------


def _conv2d_nchw(x, w):
    return lax.conv_general_dilated(
        x, w, (1, 1), [(1, 1), (1, 1)],
        dimension_numbers=("NCHW", "OIHW", "NCHW"),
        precision=lax.Precision.HIGHEST)


def _nearest_up2(x):
    return jnp.repeat(jnp.repeat(x, 2, axis=2), 2, axis=3)


def octave_conv_v1_ref(x, weights, alpha_in=0.5, alpha_out=0.5,
                       match_kernel_bf16=False):
    """match_kernel_bf16=True reproduces the kernel's bf16 roundings (inputs,
    weights, pooled input, pre-upsample low outputs) with f32 accumulation, so the
    comparison only contains accumulation-order noise."""
    N, Cin, H, W = x.shape
    Cout = weights.shape[0]
    end_h_x = int(Cin * (1 - alpha_in))
    end_h_y = int(Cout * (1 - alpha_out))
    ch = -(-Cin // 2)

    def rnd(a):
        if match_kernel_bf16:
            return a.astype(jnp.bfloat16).astype(jnp.float32)
        return a

    xr, wr = rnd(x), rnd(weights)
    X_h, X_l = xr[:, :ch], xr[:, ch:, ::2, ::2]
    X_h2l_in = rnd(X_h.reshape(N, ch, H // 2, 2, W // 2, 2).mean(axis=(3, 5)))
    X_h2h = _conv2d_nchw(X_h, wr[:end_h_y, :end_h_x])
    X_l2l = _conv2d_nchw(X_l, wr[end_h_y:, end_h_x:])
    X_h2l = _conv2d_nchw(X_h2l_in, wr[end_h_y:, :end_h_x])
    X_l2h = _conv2d_nchw(X_l, wr[:end_h_y, end_h_x:])
    hi = X_h2h + _nearest_up2(rnd(X_l2h))
    lo = _nearest_up2(rnd(X_l2l + X_h2l))
    return jnp.concatenate([hi, lo], axis=1)


# ----------------------------- main -------------------------------------------------

if __name__ == "__main__":
    key = jax.random.PRNGKey(0)
    kx, kw = jax.random.split(key)

    Cin, Cout, H, W = 4, 4, 16, 16
    configs = [
        dict(N=2, bb=None),   # auto -> 1 image/step, grid=(2,): both v7x TCs busy
        dict(N=4, bb=2),      # multi-image-per-step (lane-stacked) path, grid=(2,)
    ]

    for cfg in configs:
        N = cfg["N"]
        x = jax.random.normal(kx, (N, Cin, H, W), jnp.float32)
        weights = jax.random.normal(kw, (Cout, Cin, 3, 3), jnp.float32) * 0.1

        fn = jax.jit(functools.partial(octave_conv_v1, batch_block=cfg["bb"]))
        out = jax.block_until_ready(fn(x, weights))
        assert out.shape == (N, Cout, H, W), out.shape

        # Tight numerical check vs. a bf16-aware reference (same roundings as the
        # kernel, f32 accumulation): only accumulation-order noise remains.
        ref_bf = octave_conv_v1_ref(x, weights, match_kernel_bf16=True)
        err_bf = float(jnp.max(jnp.abs(out - ref_bf)))
        assert err_bf < 3e-2, (cfg, err_bf)

        # Faithfulness check vs. the exact f32 module semantics: bounded by the
        # bf16 input/weight rounding; structural bugs show up as O(0.3+) errors.
        ref_f32 = octave_conv_v1_ref(x, weights, match_kernel_bf16=False)
        err_f32 = float(jnp.max(jnp.abs(out - ref_f32)))
        assert err_f32 < 1.5e-1, (cfg, err_f32)

    print("KERNEL_OK")
</pallas_src>

<mosaic_0001>
module attributes {stable_mosaic.version = 11 : i64} {
  func.func @_octave_kernel(%arg0: i32, %arg1: memref<1x4x256xbf16, #tpu.memory_space<vmem>>, %arg2: memref<2x18xbf16, #tpu.memory_space<vmem>>, %arg3: memref<4x36xbf16, #tpu.memory_space<vmem>>, %arg4: memref<256x64xbf16, #tpu.memory_space<vmem>>, %arg5: memref<256x64xbf16, #tpu.memory_space<vmem>>, %arg6: memref<64x256xbf16, #tpu.memory_space<vmem>>, %arg7: memref<1x4x256xf32, #tpu.memory_space<vmem>>, %arg8: memref<2x290xf32, #tpu.memory_space<vmem>>, %arg9: memref<2x82xf32, #tpu.memory_space<vmem>>, %arg10: memref<2x82xf32, #tpu.memory_space<vmem>>, %arg11: memref<18x256xbf16, #tpu.memory_space<vmem>>, %arg12: memref<36x64xbf16, #tpu.memory_space<vmem>>) attributes {dimension_semantics = [#tpu.dimension_semantics<parallel>], iteration_bounds = array<i64: 2>, scalar_prefetch = 0 : i64, scratch_operands = 5 : i64, tpu.core_type = #tpu.core_type<tc>, window_params = [{transform_indices = @transform_0, window_bounds = array<i64: 1, 4, 256>}, {pipeline_mode = #tpu.pipeline_mode<synchronous>, transform_indices = @transform_1, window_bounds = array<i64: 2, 18>}, {pipeline_mode = #tpu.pipeline_mode<synchronous>, transform_indices = @transform_2, window_bounds = array<i64: 4, 36>}, {pipeline_mode = #tpu.pipeline_mode<synchronous>, transform_indices = @transform_3, window_bounds = array<i64: 256, 64>}, {pipeline_mode = #tpu.pipeline_mode<synchronous>, transform_indices = @transform_4, window_bounds = array<i64: 256, 64>}, {pipeline_mode = #tpu.pipeline_mode<synchronous>, transform_indices = @transform_5, window_bounds = array<i64: 64, 256>}, {transform_indices = @transform_6, window_bounds = array<i64: 1, 4, 256>}]} {
    %cst = arith.constant 0.000000e+00 : f32
    %0 = vector.broadcast %cst : f32 to vector<2x17xf32>
    %c0 = arith.constant 0 : index
    %c0_0 = arith.constant 0 : index
    %1 = vector.load %arg8[%c0, %c0_0] : memref<2x290xf32, #tpu.memory_space<vmem>>, vector<2x17xf32>
    tpu.vector_store %arg8[%c0, %c0_0], %0 {strides = array<i32>} : memref<2x290xf32, #tpu.memory_space<vmem>>, vector<2x17xf32>,
    %cst_1 = arith.constant 0.000000e+00 : f32
    %2 = vector.broadcast %cst_1 : f32 to vector<2x17xf32>
    %c0_2 = arith.constant 0 : index
    %c273 = arith.constant 273 : index
    %3 = vector.load %arg8[%c0_2, %c273] : memref<2x290xf32, #tpu.memory_space<vmem>>, vector<2x17xf32>
    tpu.vector_store %arg8[%c0_2, %c273], %2 {strides = array<i32>} : memref<2x290xf32, #tpu.memory_space<vmem>>, vector<2x17xf32>,
    %cst_3 = arith.constant 0.000000e+00 : f32
    %4 = vector.broadcast %cst_3 : f32 to vector<2x9xf32>
    %c0_4 = arith.constant 0 : index
    %c0_5 = arith.constant 0 : index
    %5 = vector.load %arg9[%c0_4, %c0_5] : memref<2x82xf32, #tpu.memory_space<vmem>>, vector<2x9xf32>
    tpu.vector_store %arg9[%c0_4, %c0_5], %4 {strides = array<i32>} : memref<2x82xf32, #tpu.memory_space<vmem>>, vector<2x9xf32>,
    %cst_6 = arith.constant 0.000000e+00 : f32
    %6 = vector.broadcast %cst_6 : f32 to vector<2x9xf32>
    %c0_7 = arith.constant 0 : index
    %c73 = arith.constant 73 : index
    %7 = vector.load %arg9[%c0_7, %c73] : memref<2x82xf32, #tpu.memory_space<vmem>>, vector<2x9xf32>
    tpu.vector_store %arg9[%c0_7, %c73], %6 {strides = array<i32>} : memref<2x82xf32, #tpu.memory_space<vmem>>, vector<2x9xf32>,
    %cst_8 = arith.constant 0.000000e+00 : f32
    %8 = vector.broadcast %cst_8 : f32 to vector<2x9xf32>
    %c0_9 = arith.constant 0 : index
    %c0_10 = arith.constant 0 : index
    %9 = vector.load %arg10[%c0_9, %c0_10] : memref<2x82xf32, #tpu.memory_space<vmem>>, vector<2x9xf32>
    tpu.vector_store %arg10[%c0_9, %c0_10], %8 {strides = array<i32>} : memref<2x82xf32, #tpu.memory_space<vmem>>, vector<2x9xf32>,
    %cst_11 = arith.constant 0.000000e+00 : f32
    %10 = vector.broadcast %cst_11 : f32 to vector<2x9xf32>
    %c0_12 = arith.constant 0 : index
    %c73_13 = arith.constant 73 : index
    %11 = vector.load %arg10[%c0_12, %c73_13] : memref<2x82xf32, #tpu.memory_space<vmem>>, vector<2x9xf32>
    tpu.vector_store %arg10[%c0_12, %c73_13], %10 {strides = array<i32>} : memref<2x82xf32, #tpu.memory_space<vmem>>, vector<2x9xf32>,
    %12 = tpu.iota {dimensions = array<i32: 1>} : vector<1x256xi32>
    %c16_i32 = arith.constant 16 : i32
    %c0_i32 = arith.constant 0 : i32
    %13 = arith.cmpi eq, %c16_i32, %c0_i32 : i32
    %c1_i32 = arith.constant 1 : i32
    %14 = arith.select %13, %c1_i32, %c16_i32 : i32
    %15 = vector.broadcast %14 : i32 to vector<1x256xi32>
    %16 = arith.remsi %12, %15 : vector<1x256xi32>
    %c0_i32_14 = arith.constant 0 : i32
    %17 = vector.broadcast %c0_i32_14 : i32 to vector<1x256xi32>
    %18 = arith.cmpi ne, %16, %17 : vector<1x256xi32>
    %c0_i32_15 = arith.constant 0 : i32
    %19 = vector.broadcast %c0_i32_15 : i32 to vector<1x256xi32>
    %20 = arith.cmpi slt, %16, %19 : vector<1x256xi32>
    %c0_i32_16 = arith.constant 0 : i32
    %21 = arith.cmpi slt, %14, %c0_i32_16 : i32
    %22 = vector.broadcast %21 : i1 to vector<1x256xi1>
    %23 = vector.broadcast %22 : vector<1x256xi1> to vector<1x256xi1>
    %24 = arith.xori %20, %23 : vector<1x256xi1>
    %25 = arith.andi %24, %18 : vector<1x256xi1>
    %26 = vector.broadcast %14 : i32 to vector<1x256xi32>
    %27 = arith.addi %16, %26 : vector<1x256xi32>
    %28 = arith.select %25, %27, %16 : vector<1x256xi1>, vector<1x256xi32>
    %29 = tpu.iota {dimensions = array<i32: 1>} : vector<1x64xi32>
    %c8_i32 = arith.constant 8 : i32
    %c0_i32_17 = arith.constant 0 : i32
    %30 = arith.cmpi eq, %c8_i32, %c0_i32_17 : i32
    %c1_i32_18 = arith.constant 1 : i32
    %31 = arith.select %30, %c1_i32_18, %c8_i32 : i32
    %32 = vector.broadcast %31 : i32 to vector<1x64xi32>
    %33 = arith.remsi %29, %32 : vector<1x64xi32>
    %c0_i32_19 = arith.constant 0 : i32
    %34 = vector.broadcast %c0_i32_19 : i32 to vector<1x64xi32>
    %35 = arith.cmpi ne, %33, %34 : vector<1x64xi32>
    %c0_i32_20 = arith.constant 0 : i32
    %36 = vector.broadcast %c0_i32_20 : i32 to vector<1x64xi32>
    %37 = arith.cmpi slt, %33, %36 : vector<1x64xi32>
    %c0_i32_21 = arith.constant 0 : i32
    %38 = arith.cmpi slt, %31, %c0_i32_21 : i32
    %39 = vector.broadcast %38 : i1 to vector<1x64xi1>
    %40 = vector.broadcast %39 : vector<1x64xi1> to vector<1x64xi1>
    %41 = arith.xori %37, %40 : vector<1x64xi1>
    %42 = arith.andi %41, %35 : vector<1x64xi1>
    %43 = vector.broadcast %31 : i32 to vector<1x64xi32>
    %44 = arith.addi %33, %43 : vector<1x64xi32>
    %45 = arith.select %42, %44, %33 : vector<1x64xi1>, vector<1x64xi32>
    %c1_i32_22 = arith.constant 1 : i32
    %46 = vector.broadcast %c1_i32_22 : i32 to vector<1x256xi32>
    %47 = arith.cmpi sge, %28, %46 : vector<1x256xi32>
    %c14_i32 = arith.constant 14 : i32
    %48 = vector.broadcast %c14_i32 : i32 to vector<1x256xi32>
    %49 = arith.cmpi sle, %28, %48 : vector<1x256xi32>
    %c1_i32_23 = arith.constant 1 : i32
    %50 = vector.broadcast %c1_i32_23 : i32 to vector<1x64xi32>
    %51 = arith.cmpi sge, %45, %50 : vector<1x64xi32>
    %c6_i32 = arith.constant 6 : i32
    %52 = vector.broadcast %c6_i32 : i32 to vector<1x64xi32>
    %53 = arith.cmpi sle, %45, %52 : vector<1x64xi32>
    %c0_24 = arith.constant 0 : index
    %c0_25 = arith.constant 0 : index
    %c0_26 = arith.constant 0 : index
    %54 = vector.load %arg1[%c0_24, %c0_25, %c0_26] : memref<1x4x256xbf16, #tpu.memory_space<vmem>>, vector<1x4x256xbf16>
    %55 = vector.shape_cast %54 : vector<1x4x256xbf16> to vector<4x256xbf16>
    %56 = vector.extract_strided_slice %55 {offsets = [0, 0], sizes = [2, 256], strides = [1, 1]} : vector<4x256xbf16> to vector<2x256xbf16>
    %57 = vector.extract_strided_slice %55 {offsets = [2, 0], sizes = [2, 256], strides = [1, 1]} : vector<4x256xbf16> to vector<2x256xbf16>
    %c0_27 = arith.constant 0 : index
    %c0_28 = arith.constant 0 : index
    %58 = vector.load %arg4[%c0_27, %c0_28] : memref<256x64xbf16, #tpu.memory_space<vmem>>, vector<256x64xbf16>
    %cst_29 = arith.constant dense<0.000000e+00> : vector<2x64xf32>
    %59 = tpu.matmul %57, %58, %cst_29 {dimension_numbers = #tpu.dot_dimension_numbers<[1], [0], [0], [1], [0, 0, 1, 1], [], []>} : vector<2x256xbf16>, vector<256x64xbf16>, vector<2x64xf32> -> vector<2x64xf32>
    %c0_30 = arith.constant 0 : index
    %c0_31 = arith.constant 0 : index
    %60 = vector.load %arg5[%c0_30, %c0_31] : memref<256x64xbf16, #tpu.memory_space<vmem>>, vector<256x64xbf16>
    %cst_32 = arith.constant dense<0.000000e+00> : vector<2x64xf32>
    %61 = tpu.matmul %56, %60, %cst_32 {dimension_numbers = #tpu.dot_dimension_numbers<[1], [0], [0], [1], [0, 0, 1, 1], [], []>} : vector<2x256xbf16>, vector<256x64xbf16>, vector<2x64xf32> -> vector<2x64xf32>
    %62 = arith.extf %56 : vector<2x256xbf16> to vector<2x256xf32>
    %c0_33 = arith.constant 0 : index
    %c17 = arith.constant 17 : index
    %63 = vector.load %arg8[%c0_33, %c17] : memref<2x290xf32, #tpu.memory_space<vmem>>, vector<2x256xf32>
    tpu.vector_store %arg8[%c0_33, %c17], %62 {strides = array<i32>} : memref<2x290xf32, #tpu.memory_space<vmem>>, vector<2x256xf32>,
    %c0_34 = arith.constant 0 : index
    %c9 = arith.constant 9 : index
    %64 = vector.load %arg9[%c0_34, %c9] : memref<2x82xf32, #tpu.memory_space<vmem>>, vector<2x64xf32>
    tpu.vector_store %arg9[%c0_34, %c9], %59 {strides = array<i32>} : memref<2x82xf32, #tpu.memory_space<vmem>>, vector<2x64xf32>,
    %c0_35 = arith.constant 0 : index
    %c9_36 = arith.constant 9 : index
    %65 = vector.load %arg10[%c0_35, %c9_36] : memref<2x82xf32, #tpu.memory_space<vmem>>, vector<2x64xf32>
    tpu.vector_store %arg10[%c0_35, %c9_36], %61 {strides = array<i32>} : memref<2x82xf32, #tpu.memory_space<vmem>>, vector<2x64xf32>,
    %c0_37 = arith.constant 0 : index
    %c0_38 = arith.constant 0 : index
    %66 = vector.load %arg8[%c0_37, %c0_38] : memref<2x290xf32, #tpu.memory_space<vmem>>, vector<2x256xf32>
    %c0_39 = arith.constant 0 : index
    %c0_40 = arith.constant 0 : index
    %67 = vector.load %arg9[%c0_39, %c0_40] : memref<2x82xf32, #tpu.memory_space<vmem>>, vector<2x64xf32>
    %c0_41 = arith.constant 0 : index
    %c0_42 = arith.constant 0 : index
    %68 = vector.load %arg10[%c0_41, %c0_42] : memref<2x82xf32, #tpu.memory_space<vmem>>, vector<2x64xf32>
    %cst_43 = arith.constant 0.000000e+00 : f32
    %69 = vector.broadcast %cst_43 : f32 to vector<2x256xf32>
    %70 = vector.shape_cast %47 : vector<1x256xi1> to vector<1x256xi1>
    %71 = vector.broadcast %70 : vector<1x256xi1> to vector<2x256xi1>
    %72 = arith.select %71, %66, %69 : vector<2x256xi1>, vector<2x256xf32>
    %cst_44 = arith.constant 0.000000e+00 : f32
    %73 = vector.broadcast %cst_44 : f32 to vector<2x64xf32>
    %74 = vector.shape_cast %51 : vector<1x64xi1> to vector<1x64xi1>
    %75 = vector.broadcast %74 : vector<1x64xi1> to vector<2x64xi1>
    %76 = arith.select %75, %67, %73 : vector<2x64xi1>, vector<2x64xf32>
    %cst_45 = arith.constant 0.000000e+00 : f32
    %77 = vector.broadcast %cst_45 : f32 to vector<2x64xf32>
    %78 = vector.shape_cast %51 : vector<1x64xi1> to vector<1x64xi1>
    %79 = vector.broadcast %78 : vector<1x64xi1> to vector<2x64xi1>
    %80 = arith.select %79, %68, %77 : vector<2x64xi1>, vector<2x64xf32>
    %81 = arith.truncf %72 : vector<2x256xf32> to vector<2x256xbf16>
    %c0_46 = arith.constant 0 : index
    %c0_47 = arith.constant 0 : index
    %82 = vector.load %arg11[%c0_46, %c0_47] : memref<18x256xbf16, #tpu.memory_space<vmem>>, vector<2x256xbf16>
    tpu.vector_store %arg11[%c0_46, %c0_47], %81 {strides = array<i32>} : memref<18x256xbf16, #tpu.memory_space<vmem>>, vector<2x256xbf16>,
    %83 = arith.truncf %76 : vector<2x64xf32> to vector<2x64xbf16>
    %c0_48 = arith.constant 0 : index
    %c0_49 = arith.constant 0 : index
    %84 = vector.load %arg12[%c0_48, %c0_49] : memref<36x64xbf16, #tpu.memory_space<vmem>>, vector<2x64xbf16>
    tpu.vector_store %arg12[%c0_48, %c0_49], %83 {strides = array<i32>} : memref<36x64xbf16, #tpu.memory_space<vmem>>, vector<2x64xbf16>,
    %85 = arith.truncf %80 : vector<2x64xf32> to vector<2x64xbf16>
    %c18 = arith.constant 18 : index
    %c0_50 = arith.constant 0 : index
    %86 = vector.load %arg12[%c18, %c0_50] : memref<36x64xbf16, #tpu.memory_space<vmem>>, vector<2x64xbf16>
    tpu.vector_store %arg12[%c18, %c0_50], %85 {strides = array<i32>} : memref<36x64xbf16, #tpu.memory_space<vmem>>, vector<2x64xbf16>,
    %c0_51 = arith.constant 0 : index
    %c1 = arith.constant 1 : index
    %87 = vector.load %arg8[%c0_51, %c1] : memref<2x290xf32, #tpu.memory_space<vmem>>, vector<2x256xf32>
    %c0_52 = arith.constant 0 : index
    %c1_53 = arith.constant 1 : index
    %88 = vector.load %arg9[%c0_52, %c1_53] : memref<2x82xf32, #tpu.memory_space<vmem>>, vector<2x64xf32>
    %c0_54 = arith.constant 0 : index
    %c1_55 = arith.constant 1 : index
    %89 = vector.load %arg10[%c0_54, %c1_55] : memref<2x82xf32, #tpu.memory_space<vmem>>, vector<2x64xf32>
    %90 = arith.truncf %87 : vector<2x256xf32> to vector<2x256xbf16>
    %c2 = arith.constant 2 : index
    %c0_56 = arith.constant 0 : index
    %91 = vector.load %arg11[%c2, %c0_56] : memref<18x256xbf16, #tpu.memory_space<vmem>>, vector<2x256xbf16>
    tpu.vector_store %arg11[%c2, %c0_56], %90 {strides = array<i32>} : memref<18x256xbf16, #tpu.memory_space<vmem>>, vector<2x256xbf16>,
    %92 = arith.truncf %88 : vector<2x64xf32> to vector<2x64xbf16>
    %c2_57 = arith.constant 2 : index
    %c0_58 = arith.constant 0 : index
    %93 = vector.load %arg12[%c2_57, %c0_58] : memref<36x64xbf16, #tpu.memory_space<vmem>>, vector<2x64xbf16>
    tpu.vector_store %arg12[%c2_57, %c0_58], %92 {strides = array<i32>} : memref<36x64xbf16, #tpu.memory_space<vmem>>, vector<2x64xbf16>,
    %94 = arith.truncf %89 : vector<2x64xf32> to vector<2x64xbf16>
    %c20 = arith.constant 20 : index
    %c0_59 = arith.constant 0 : index
    %95 = vector.load %arg12[%c20, %c0_59] : memref<36x64xbf16, #tpu.memory_space<vmem>>, vector<2x64xbf16>
    tpu.vector_store %arg12[%c20, %c0_59], %94 {strides = array<i32>} : memref<36x64xbf16, #tpu.memory_space<vmem>>, vector<2x64xbf16>,
    %c0_60 = arith.constant 0 : index
    %c2_61 = arith.constant 2 : index
    %96 = vector.load %arg8[%c0_60, %c2_61] : memref<2x290xf32, #tpu.memory_space<vmem>>, vector<2x256xf32>
    %c0_62 = arith.constant 0 : index
    %c2_63 = arith.constant 2 : index
    %97 = vector.load %arg9[%c0_62, %c2_63] : memref<2x82xf32, #tpu.memory_space<vmem>>, vector<2x64xf32>
    %c0_64 = arith.constant 0 : index
    %c2_65 = arith.constant 2 : index
    %98 = vector.load %arg10[%c0_64, %c2_65] : memref<2x82xf32, #tpu.memory_space<vmem>>, vector<2x64xf32>
    %cst_66 = arith.constant 0.000000e+00 : f32
    %99 = vector.broadcast %cst_66 : f32 to vector<2x256xf32>
    %100 = vector.shape_cast %49 : vector<1x256xi1> to vector<1x256xi1>
    %101 = vector.broadcast %100 : vector<1x256xi1> to vector<2x256xi1>
    %102 = arith.select %101, %96, %99 : vector<2x256xi1>, vector<2x256xf32>
    %cst_67 = arith.constant 0.000000e+00 : f32
    %103 = vector.broadcast %cst_67 : f32 to vector<2x64xf32>
    %104 = vector.shape_cast %53 : vector<1x64xi1> to vector<1x64xi1>
    %105 = vector.broadcast %104 : vector<1x64xi1> to vector<2x64xi1>
    %106 = arith.select %105, %97, %103 : vector<2x64xi1>, vector<2x64xf32>
    %cst_68 = arith.constant 0.000000e+00 : f32
    %107 = vector.broadcast %cst_68 : f32 to vector<2x64xf32>
    %108 = vector.shape_cast %53 : vector<1x64xi1> to vector<1x64xi1>
    %109 = vector.broadcast %108 : vector<1x64xi1> to vector<2x64xi1>
    %110 = arith.select %109, %98, %107 : vector<2x64xi1>, vector<2x64xf32>
    %111 = arith.truncf %102 : vector<2x256xf32> to vector<2x256xbf16>
    %c4 = arith.constant 4 : index
    %c0_69 = arith.constant 0 : index
    %112 = vector.load %arg11[%c4, %c0_69] : memref<18x256xbf16, #tpu.memory_space<vmem>>, vector<2x256xbf16>
    tpu.vector_store %arg11[%c4, %c0_69], %111 {strides = array<i32>} : memref<18x256xbf16, #tpu.memory_space<vmem>>, vector<2x256xbf16>,
    %113 = arith.truncf %106 : vector<2x64xf32> to vector<2x64xbf16>
    %c4_70 = arith.constant 4 : index
    %c0_71 = arith.constant 0 : index
    %114 = vector.load %arg12[%c4_70, %c0_71] : memref<36x64xbf16, #tpu.memory_space<vmem>>, vector<2x64xbf16>
    tpu.vector_store %arg12[%c4_70, %c0_71], %113 {strides = array<i32>} : memref<36x64xbf16, #tpu.memory_space<vmem>>, vector<2x64xbf16>,
    %115 = arith.truncf %110 : vector<2x64xf32> to vector<2x64xbf16>
    %c22 = arith.constant 22 : index
    %c0_72 = arith.constant 0 : index
    %116 = vector.load %arg12[%c22, %c0_72] : memref<36x64xbf16, #tpu.memory_space<vmem>>, vector<2x64xbf16>
    tpu.vector_store %arg12[%c22, %c0_72], %115 {strides = array<i32>} : memref<36x64xbf16, #tpu.memory_space<vmem>>, vector<2x64xbf16>,
    %c0_73 = arith.constant 0 : index
    %c16 = arith.constant 16 : index
    %117 = vector.load %arg8[%c0_73, %c16] : memref<2x290xf32, #tpu.memory_space<vmem>>, vector<2x256xf32>
    %c0_74 = arith.constant 0 : index
    %c8 = arith.constant 8 : index
    %118 = vector.load %arg9[%c0_74, %c8] : memref<2x82xf32, #tpu.memory_space<vmem>>, vector<2x64xf32>
    %c0_75 = arith.constant 0 : index
    %c8_76 = arith.constant 8 : index
    %119 = vector.load %arg10[%c0_75, %c8_76] : memref<2x82xf32, #tpu.memory_space<vmem>>, vector<2x64xf32>
    %cst_77 = arith.constant 0.000000e+00 : f32
    %120 = vector.broadcast %cst_77 : f32 to vector<2x256xf32>
    %121 = vector.shape_cast %47 : vector<1x256xi1> to vector<1x256xi1>
    %122 = vector.broadcast %121 : vector<1x256xi1> to vector<2x256xi1>
    %123 = arith.select %122, %117, %120 : vector<2x256xi1>, vector<2x256xf32>
    %cst_78 = arith.constant 0.000000e+00 : f32
    %124 = vector.broadcast %cst_78 : f32 to vector<2x64xf32>
    %125 = vector.shape_cast %51 : vector<1x64xi1> to vector<1x64xi1>
    %126 = vector.broadcast %125 : vector<1x64xi1> to vector<2x64xi1>
    %127 = arith.select %126, %118, %124 : vector<2x64xi1>, vector<2x64xf32>
    %cst_79 = arith.constant 0.000000e+00 : f32
    %128 = vector.broadcast %cst_79 : f32 to vector<2x64xf32>
    %129 = vector.shape_cast %51 : vector<1x64xi1> to vector<1x64xi1>
    %130 = vector.broadcast %129 : vector<1x64xi1> to vector<2x64xi1>
    %131 = arith.select %130, %119, %128 : vector<2x64xi1>, vector<2x64xf32>
    %132 = arith.truncf %123 : vector<2x256xf32> to vector<2x256xbf16>
    %c6 = arith.constant 6 : index
    %c0_80 = arith.constant 0 : index
    %133 = vector.load %arg11[%c6, %c0_80] : memref<18x256xbf16, #tpu.memory_space<vmem>>, vector<2x256xbf16>
    tpu.vector_store %arg11[%c6, %c0_80], %132 {strides = array<i32>} : memref<18x256xbf16, #tpu.memory_space<vmem>>, vector<2x256xbf16>,
    %134 = arith.truncf %127 : vector<2x64xf32> to vector<2x64xbf16>
    %c6_81 = arith.constant 6 : index
    %c0_82 = arith.constant 0 : index
    %135 = vector.load %arg12[%c6_81, %c0_82] : memref<36x64xbf16, #tpu.memory_space<vmem>>, vector<2x64xbf16>
    tpu.vector_store %arg12[%c6_81, %c0_82], %134 {strides = array<i32>} : memref<36x64xbf16, #tpu.memory_space<vmem>>, vector<2x64xbf16>,
    %136 = arith.truncf %131 : vector<2x64xf32> to vector<2x64xbf16>
    %c24 = arith.constant 24 : index
    %c0_83 = arith.constant 0 : index
    %137 = vector.load %arg12[%c24, %c0_83] : memref<36x64xbf16, #tpu.memory_space<vmem>>, vector<2x64xbf16>
    tpu.vector_store %arg12[%c24, %c0_83], %136 {strides = array<i32>} : memref<36x64xbf16, #tpu.memory_space<vmem>>, vector<2x64xbf16>,
    %c0_84 = arith.constant 0 : index
    %c17_85 = arith.constant 17 : index
    %138 = vector.load %arg8[%c0_84, %c17_85] : memref<2x290xf32, #tpu.memory_space<vmem>>, vector<2x256xf32>
    %c0_86 = arith.constant 0 : index
    %c9_87 = arith.constant 9 : index
    %139 = vector.load %arg9[%c0_86, %c9_87] : memref<2x82xf32, #tpu.memory_space<vmem>>, vector<2x64xf32>
    %c0_88 = arith.constant 0 : index
    %c9_89 = arith.constant 9 : index
    %140 = vector.load %arg10[%c0_88, %c9_89] : memref<2x82xf32, #tpu.memory_space<vmem>>, vector<2x64xf32>
    %141 = arith.truncf %138 : vector<2x256xf32> to vector<2x256xbf16>
    %c8_90 = arith.constant 8 : index
    %c0_91 = arith.constant 0 : index
    %142 = vector.load %arg11[%c8_90, %c0_91] : memref<18x256xbf16, #tpu.memory_space<vmem>>, vector<2x256xbf16>
    tpu.vector_store %arg11[%c8_90, %c0_91], %141 {strides = array<i32>} : memref<18x256xbf16, #tpu.memory_space<vmem>>, vector<2x256xbf16>,
    %143 = arith.truncf %139 : vector<2x64xf32> to vector<2x64xbf16>
    %c8_92 = arith.constant 8 : index
    %c0_93 = arith.constant 0 : index
    %144 = vector.load %arg12[%c8_92, %c0_93] : memref<36x64xbf16, #tpu.memory_space<vmem>>, vector<2x64xbf16>
    tpu.vector_store %arg12[%c8_92, %c0_93], %143 {strides = array<i32>} : memref<36x64xbf16, #tpu.memory_space<vmem>>, vector<2x64xbf16>,
    %145 = arith.truncf %140 : vector<2x64xf32> to vector<2x64xbf16>
    %c26 = arith.constant 26 : index
    %c0_94 = arith.constant 0 : index
    %146 = vector.load %arg12[%c26, %c0_94] : memref<36x64xbf16, #tpu.memory_space<vmem>>, vector<2x64xbf16>
    tpu.vector_store %arg12[%c26, %c0_94], %145 {strides = array<i32>} : memref<36x64xbf16, #tpu.memory_space<vmem>>, vector<2x64xbf16>,
    %c0_95 = arith.constant 0 : index
    %c18_96 = arith.constant 18 : index
    %147 = vector.load %arg8[%c0_95, %c18_96] : memref<2x290xf32, #tpu.memory_space<vmem>>, vector<2x256xf32>
    %c0_97 = arith.constant 0 : index
    %c10 = arith.constant 10 : index
    %148 = vector.load %arg9[%c0_97, %c10] : memref<2x82xf32, #tpu.memory_space<vmem>>, vector<2x64xf32>
    %c0_98 = arith.constant 0 : index
    %c10_99 = arith.constant 10 : index
    %149 = vector.load %arg10[%c0_98, %c10_99] : memref<2x82xf32, #tpu.memory_space<vmem>>, vector<2x64xf32>
    %cst_100 = arith.constant 0.000000e+00 : f32
    %150 = vector.broadcast %cst_100 : f32 to vector<2x256xf32>
    %151 = vector.shape_cast %49 : vector<1x256xi1> to vector<1x256xi1>
    %152 = vector.broadcast %151 : vector<1x256xi1> to vector<2x256xi1>
    %153 = arith.select %152, %147, %150 : vector<2x256xi1>, vector<2x256xf32>
    %cst_101 = arith.constant 0.000000e+00 : f32
    %154 = vector.broadcast %cst_101 : f32 to vector<2x64xf32>
    %155 = vector.shape_cast %53 : vector<1x64xi1> to vector<1x64xi1>
    %156 = vector.broadcast %155 : vector<1x64xi1> to vector<2x64xi1>
    %157 = arith.select %156, %148, %154 : vector<2x64xi1>, vector<2x64xf32>
    %cst_102 = arith.constant 0.000000e+00 : f32
    %158 = vector.broadcast %cst_102 : f32 to vector<2x64xf32>
    %159 = vector.shape_cast %53 : vector<1x64xi1> to vector<1x64xi1>
    %160 = vector.broadcast %159 : vector<1x64xi1> to vector<2x64xi1>
    %161 = arith.select %160, %149, %158 : vector<2x64xi1>, vector<2x64xf32>
    %162 = arith.truncf %153 : vector<2x256xf32> to vector<2x256xbf16>
    %c10_103 = arith.constant 10 : index
    %c0_104 = arith.constant 0 : index
    %163 = vector.load %arg11[%c10_103, %c0_104] : memref<18x256xbf16, #tpu.memory_space<vmem>>, vector<2x256xbf16>
    tpu.vector_store %arg11[%c10_103, %c0_104], %162 {strides = array<i32>} : memref<18x256xbf16, #tpu.memory_space<vmem>>, vector<2x256xbf16>,
    %164 = arith.truncf %157 : vector<2x64xf32> to vector<2x64xbf16>
    %c10_105 = arith.constant 10 : index
    %c0_106 = arith.constant 0 : index
    %165 = vector.load %arg12[%c10_105, %c0_106] : memref<36x64xbf16, #tpu.memory_space<vmem>>, vector<2x64xbf16>
    tpu.vector_store %arg12[%c10_105, %c0_106], %164 {strides = array<i32>} : memref<36x64xbf16, #tpu.memory_space<vmem>>, vector<2x64xbf16>,
    %166 = arith.truncf %161 : vector<2x64xf32> to vector<2x64xbf16>
    %c28 = arith.constant 28 : index
    %c0_107 = arith.constant 0 : index
    %167 = vector.load %arg12[%c28, %c0_107] : memref<36x64xbf16, #tpu.memory_space<vmem>>, vector<2x64xbf16>
    tpu.vector_store %arg12[%c28, %c0_107], %166 {strides = array<i32>} : memref<36x64xbf16, #tpu.memory_space<vmem>>, vector<2x64xbf16>,
    %c0_108 = arith.constant 0 : index
    %c32 = arith.constant 32 : index
    %168 = vector.load %arg8[%c0_108, %c32] : memref<2x290xf32, #tpu.memory_space<vmem>>, vector<2x256xf32>
    %c0_109 = arith.constant 0 : index
    %c16_110 = arith.constant 16 : index
    %169 = vector.load %arg9[%c0_109, %c16_110] : memref<2x82xf32, #tpu.memory_space<vmem>>, vector<2x64xf32>
    %c0_111 = arith.constant 0 : index
    %c16_112 = arith.constant 16 : index
    %170 = vector.load %arg10[%c0_111, %c16_112] : memref<2x82xf32, #tpu.memory_space<vmem>>, vector<2x64xf32>
    %cst_113 = arith.constant 0.000000e+00 : f32
    %171 = vector.broadcast %cst_113 : f32 to vector<2x256xf32>
    %172 = vector.shape_cast %47 : vector<1x256xi1> to vector<1x256xi1>
    %173 = vector.broadcast %172 : vector<1x256xi1> to vector<2x256xi1>
    %174 = arith.select %173, %168, %171 : vector<2x256xi1>, vector<2x256xf32>
    %cst_114 = arith.constant 0.000000e+00 : f32
    %175 = vector.broadcast %cst_114 : f32 to vector<2x64xf32>
    %176 = vector.shape_cast %51 : vector<1x64xi1> to vector<1x64xi1>
    %177 = vector.broadcast %176 : vector<1x64xi1> to vector<2x64xi1>
    %178 = arith.select %177, %169, %175 : vector<2x64xi1>, vector<2x64xf32>
    %cst_115 = arith.constant 0.000000e+00 : f32
    %179 = vector.broadcast %cst_115 : f32 to vector<2x64xf32>
    %180 = vector.shape_cast %51 : vector<1x64xi1> to vector<1x64xi1>
    %181 = vector.broadcast %180 : vector<1x64xi1> to vector<2x64xi1>
    %182 = arith.select %181, %170, %179 : vector<2x64xi1>, vector<2x64xf32>
    %183 = arith.truncf %174 : vector<2x256xf32> to vector<2x256xbf16>
    %c12 = arith.constant 12 : index
    %c0_116 = arith.constant 0 : index
    %184 = vector.load %arg11[%c12, %c0_116] : memref<18x256xbf16, #tpu.memory_space<vmem>>, vector<2x256xbf16>
    tpu.vector_store %arg11[%c12, %c0_116], %183 {strides = array<i32>} : memref<18x256xbf16, #tpu.memory_space<vmem>>, vector<2x256xbf16>,
    %185 = arith.truncf %178 : vector<2x64xf32> to vector<2x64xbf16>
    %c12_117 = arith.constant 12 : index
    %c0_118 = arith.constant 0 : index
    %186 = vector.load %arg12[%c12_117, %c0_118] : memref<36x64xbf16, #tpu.memory_space<vmem>>, vector<2x64xbf16>
    tpu.vector_store %arg12[%c12_117, %c0_118], %185 {strides = array<i32>} : memref<36x64xbf16, #tpu.memory_space<vmem>>, vector<2x64xbf16>,
    %187 = arith.truncf %182 : vector<2x64xf32> to vector<2x64xbf16>
    %c30 = arith.constant 30 : index
    %c0_119 = arith.constant 0 : index
    %188 = vector.load %arg12[%c30, %c0_119] : memref<36x64xbf16, #tpu.memory_space<vmem>>, vector<2x64xbf16>
    tpu.vector_store %arg12[%c30, %c0_119], %187 {strides = array<i32>} : memref<36x64xbf16, #tpu.memory_space<vmem>>, vector<2x64xbf16>,
    %c0_120 = arith.constant 0 : index
    %c33 = arith.constant 33 : index
    %189 = vector.load %arg8[%c0_120, %c33] : memref<2x290xf32, #tpu.memory_space<vmem>>, vector<2x256xf32>
    %c0_121 = arith.constant 0 : index
    %c17_122 = arith.constant 17 : index
    %190 = vector.load %arg9[%c0_121, %c17_122] : memref<2x82xf32, #tpu.memory_space<vmem>>, vector<2x64xf32>
    %c0_123 = arith.constant 0 : index
    %c17_124 = arith.constant 17 : index
    %191 = vector.load %arg10[%c0_123, %c17_124] : memref<2x82xf32, #tpu.memory_space<vmem>>, vector<2x64xf32>
    %192 = arith.truncf %189 : vector<2x256xf32> to vector<2x256xbf16>
    %c14 = arith.constant 14 : index
    %c0_125 = arith.constant 0 : index
    %193 = vector.load %arg11[%c14, %c0_125] : memref<18x256xbf16, #tpu.memory_space<vmem>>, vector<2x256xbf16>
    tpu.vector_store %arg11[%c14, %c0_125], %192 {strides = array<i32>} : memref<18x256xbf16, #tpu.memory_space<vmem>>, vector<2x256xbf16>,
    %194 = arith.truncf %190 : vector<2x64xf32> to vector<2x64xbf16>
    %c14_126 = arith.constant 14 : index
    %c0_127 = arith.constant 0 : index
    %195 = vector.load %arg12[%c14_126, %c0_127] : memref<36x64xbf16, #tpu.memory_space<vmem>>, vector<2x64xbf16>
    tpu.vector_store %arg12[%c14_126, %c0_127], %194 {strides = array<i32>} : memref<36x64xbf16, #tpu.memory_space<vmem>>, vector<2x64xbf16>,
    %196 = arith.truncf %191 : vector<2x64xf32> to vector<2x64xbf16>
    %c32_128 = arith.constant 32 : index
    %c0_129 = arith.constant 0 : index
    %197 = vector.load %arg12[%c32_128, %c0_129] : memref<36x64xbf16, #tpu.memory_space<vmem>>, vector<2x64xbf16>
    tpu.vector_store %arg12[%c32_128, %c0_129], %196 {strides = array<i32>} : memref<36x64xbf16, #tpu.memory_space<vmem>>, vector<2x64xbf16>,
    %c0_130 = arith.constant 0 : index
    %c34 = arith.constant 34 : index
    %198 = vector.load %arg8[%c0_130, %c34] : memref<2x290xf32, #tpu.memory_space<vmem>>, vector<2x256xf32>
    %c0_131 = arith.constant 0 : index
    %c18_132 = arith.constant 18 : index
    %199 = vector.load %arg9[%c0_131, %c18_132] : memref<2x82xf32, #tpu.memory_space<vmem>>, vector<2x64xf32>
    %c0_133 = arith.constant 0 : index
    %c18_134 = arith.constant 18 : index
    %200 = vector.load %arg10[%c0_133, %c18_134] : memref<2x82xf32, #tpu.memory_space<vmem>>, vector<2x64xf32>
    %cst_135 = arith.constant 0.000000e+00 : f32
    %201 = vector.broadcast %cst_135 : f32 to vector<2x256xf32>
    %202 = vector.shape_cast %49 : vector<1x256xi1> to vector<1x256xi1>
    %203 = vector.broadcast %202 : vector<1x256xi1> to vector<2x256xi1>
    %204 = arith.select %203, %198, %201 : vector<2x256xi1>, vector<2x256xf32>
    %cst_136 = arith.constant 0.000000e+00 : f32
    %205 = vector.broadcast %cst_136 : f32 to vector<2x64xf32>
    %206 = vector.shape_cast %53 : vector<1x64xi1> to vector<1x64xi1>
    %207 = vector.broadcast %206 : vector<1x64xi1> to vector<2x64xi1>
    %208 = arith.select %207, %199, %205 : vector<2x64xi1>, vector<2x64xf32>
    %cst_137 = arith.constant 0.000000e+00 : f32
    %209 = vector.broadcast %cst_137 : f32 to vector<2x64xf32>
    %210 = vector.shape_cast %53 : vector<1x64xi1> to vector<1x64xi1>
    %211 = vector.broadcast %210 : vector<1x64xi1> to vector<2x64xi1>
    %212 = arith.select %211, %200, %209 : vector<2x64xi1>, vector<2x64xf32>
    %213 = arith.truncf %204 : vector<2x256xf32> to vector<2x256xbf16>
    %c16_138 = arith.constant 16 : index
    %c0_139 = arith.constant 0 : index
    %214 = vector.load %arg11[%c16_138, %c0_139] : memref<18x256xbf16, #tpu.memory_space<vmem>>, vector<2x256xbf16>
    tpu.vector_store %arg11[%c16_138, %c0_139], %213 {strides = array<i32>} : memref<18x256xbf16, #tpu.memory_space<vmem>>, vector<2x256xbf16>,
    %215 = arith.truncf %208 : vector<2x64xf32> to vector<2x64xbf16>
    %c16_140 = arith.constant 16 : index
    %c0_141 = arith.constant 0 : index
    %216 = vector.load %arg12[%c16_140, %c0_141] : memref<36x64xbf16, #tpu.memory_space<vmem>>, vector<2x64xbf16>
    tpu.vector_store %arg12[%c16_140, %c0_141], %215 {strides = array<i32>} : memref<36x64xbf16, #tpu.memory_space<vmem>>, vector<2x64xbf16>,
    %217 = arith.truncf %212 : vector<2x64xf32> to vector<2x64xbf16>
    %c34_142 = arith.constant 34 : index
    %c0_143 = arith.constant 0 : index
    %218 = vector.load %arg12[%c34_142, %c0_143] : memref<36x64xbf16, #tpu.memory_space<vmem>>, vector<2x64xbf16>
    tpu.vector_store %arg12[%c34_142, %c0_143], %217 {strides = array<i32>} : memref<36x64xbf16, #tpu.memory_space<vmem>>, vector<2x64xbf16>,
    %c0_144 = arith.constant 0 : index
    %c0_145 = arith.constant 0 : index
    %219 = vector.load %arg2[%c0_144, %c0_145] : memref<2x18xbf16, #tpu.memory_space<vmem>>, vector<2x18xbf16>
    %c0_146 = arith.constant 0 : index
    %c0_147 = arith.constant 0 : index
    %220 = vector.load %arg11[%c0_146, %c0_147] : memref<18x256xbf16, #tpu.memory_space<vmem>>, vector<18x256xbf16>
    %cst_148 = arith.constant dense<0.000000e+00> : vector<2x256xf32>
    %221 = tpu.matmul %219, %220, %cst_148 {dimension_numbers = #tpu.dot_dimension_numbers<[1], [0], [0], [1], [0, 0, 1, 1], [], []>} : vector<2x18xbf16>, vector<18x256xbf16>, vector<2x256xf32> -> vector<2x256xf32>
    %c0_149 = arith.constant 0 : index
    %c0_150 = arith.constant 0 : index
    %222 = vector.load %arg3[%c0_149, %c0_150] : memref<4x36xbf16, #tpu.memory_space<vmem>>, vector<4x36xbf16>
    %c0_151 = arith.constant 0 : index
    %c0_152 = arith.constant 0 : index
    %223 = vector.load %arg12[%c0_151, %c0_152] : memref<36x64xbf16, #tpu.memory_space<vmem>>, vector<36x64xbf16>
    %cst_153 = arith.constant dense<0.000000e+00> : vector<4x64xf32>
    %224 = tpu.matmul %222, %223, %cst_153 {dimension_numbers = #tpu.dot_dimension_numbers<[1], [0], [0], [1], [0, 0, 1, 1], [], []>} : vector<4x36xbf16>, vector<36x64xbf16>, vector<4x64xf32> -> vector<4x64xf32>
    %225 = arith.truncf %224 : vector<4x64xf32> to vector<4x64xbf16>
    %c0_154 = arith.constant 0 : index
    %c0_155 = arith.constant 0 : index
    %226 = vector.load %arg6[%c0_154, %c0_155] : memref<64x256xbf16, #tpu.memory_space<vmem>>, vector<64x256xbf16>
    %cst_156 = arith.constant dense<0.000000e+00> : vector<4x256xf32>
    %227 = tpu.matmul %225, %226, %cst_156 {dimension_numbers = #tpu.dot_dimension_numbers<[1], [0], [0], [1], [0, 0, 1, 1], [], []>} : vector<4x64xbf16>, vector<64x256xbf16>, vector<4x256xf32> -> vector<4x256xf32>
    %228 = vector.extract_strided_slice %227 {offsets = [0, 0], sizes = [2, 256], strides = [1, 1]} : vector<4x256xf32> to vector<2x256xf32>
    %229 = arith.addf %221, %228 : vector<2x256xf32>
    %230 = vector.extract_strided_slice %227 {offsets = [2, 0], sizes = [2, 256], strides = [1, 1]} : vector<4x256xf32> to vector<2x256xf32>
    %231 = tpu.concatenate %229, %230 in 0 : vector<2x256xf32>, vector<2x256xf32> -> vector<4x256xf32>
    %c0_157 = arith.constant 0 : index
    %c0_158 = arith.constant 0 : index
    %c0_159 = arith.constant 0 : index
    %232 = vector.load %arg7[%c0_157, %c0_158, %c0_159] : memref<1x4x256xf32, #tpu.memory_space<vmem>>, vector<1x4x256xf32>
    %233 = vector.shape_cast %232 : vector<1x4x256xf32> to vector<4x256xf32>
    %234 = vector.shape_cast %231 : vector<4x256xf32> to vector<1x4x256xf32>
    tpu.vector_store %arg7[%c0_157, %c0_158, %c0_159], %234 {strides = array<i32>} : memref<1x4x256xf32, #tpu.memory_space<vmem>>, vector<1x4x256xf32>,
    return
  }
  func.func @transform_0(%arg0: i32) -> (i32, i32, i32) {
    %c0_i32 = arith.constant 0 : i32
    %c0_i32_0 = arith.constant 0 : i32
    %c0_i32_1 = arith.constant 0 : i32
    return %arg0, %c0_i32, %c0_i32_0 : i32, i32, i32
  }
  func.func @transform_1(%arg0: i32) -> (i32, i32) {
    %c0_i32 = arith.constant 0 : i32
    %c0_i32_0 = arith.constant 0 : i32
    %c0_i32_1 = arith.constant 0 : i32
    return %c0_i32, %c0_i32_0 : i32, i32
  }
  func.func @transform_2(%arg0: i32) -> (i32, i32) {
    %c0_i32 = arith.constant 0 : i32
    %c0_i32_0 = arith.constant 0 : i32
    %c0_i32_1 = arith.constant 0 : i32
    return %c0_i32, %c0_i32_0 : i32, i32
  }
  func.func @transform_3(%arg0: i32) -> (i32, i32) {
    %c0_i32 = arith.constant 0 : i32
    %c0_i32_0 = arith.constant 0 : i32
    %c0_i32_1 = arith.constant 0 : i32
    return %c0_i32, %c0_i32_0 : i32, i32
  }
  func.func @transform_4(%arg0: i32) -> (i32, i32) {
    %c0_i32 = arith.constant 0 : i32
    %c0_i32_0 = arith.constant 0 : i32
    %c0_i32_1 = arith.constant 0 : i32
    return %c0_i32, %c0_i32_0 : i32, i32
  }
  func.func @transform_5(%arg0: i32) -> (i32, i32) {
    %c0_i32 = arith.constant 0 : i32
    %c0_i32_0 = arith.constant 0 : i32
    %c0_i32_1 = arith.constant 0 : i32
    return %c0_i32, %c0_i32_0 : i32, i32
  }
  func.func @transform_6(%arg0: i32) -> (i32, i32, i32) {
    %c0_i32 = arith.constant 0 : i32
    %c0_i32_0 = arith.constant 0 : i32
    %c0_i32_1 = arith.constant 0 : i32
    return %arg0, %c0_i32, %c0_i32_0 : i32, i32, i32
  }
}

</mosaic_0001>

<bundles_post_ra>
// kernel: octave_conv_v1.1
= control target key start
LH: loop header
LB: loop body
LE: loop exit
PB: predicated region body
PF: predicated region fallthrough
CT: control target
= control target key end

     0   :  { %s1928_s21 = smov 0   ;;  %s2243_s0 = inlined_call_operand.vmem [shape: bf16[2,4,256], index: 0, kind: input, shape index: {}]   ;;  %s2244_s1 = inlined_call_operand.vmem [shape: bf16[2,18], index: 1, kind: input, shape index: {}]   ;;  %s2245_s2 = inlined_call_operand.vmem [shape: bf16[4,36], index: 2, kind: input, shape index: {}]   ;;  %s2246_s3 = inlined_call_operand.vmem [shape: bf16[256,64], index: 3, kind: input, shape index: {}]   ;;  %s2247_s4 = inlined_call_operand.vmem [shape: bf16[256,64], index: 4, kind: input, shape index: {}]   ;;  %s2248_s5 = inlined_call_operand.vmem [shape: bf16[64,256], index: 5, kind: input, shape index: {}]   ;;  %s2249_s6 = inlined_call_operand.vmem [shape: f32[2,4,256], index: 6, kind: output, shape index: {}]  }
   0x1 LB: > { %s1556_s22 = sadd.s32 4294967295, %s1874_s21   ;;  %p1560_p0 = scmp.ge.s32.totalorder %s1874_s21, 1  ;;  %s1874_s21 = sphi %s1928_s21, %s16_s21  }
   0x2   : > { %p212_p1 = scmp.lt.s32.totalorder %s1874_s21, 3 }
   0x4   : > { %p213_p2 = pnand %p1560_p0, %p212_p1 }
   0x5   : > { %v1808_v0 = vld [vmem:[%s2246_s3 + $0x40] sm:$0xff] (!%p213_p2)   ;;  %v1812_v4 = vld [vmem:[%s2246_s3 + $0x48] sm:$0xff] (!%p213_p2)   ;;  %v1816_v8 = vld [vmem:[%s2246_s3 + $0x50] sm:$0xff] (!%p213_p2)   ;;  %p242_p3 = scmp.lt.s32.totalorder (!%p213_p2), %s1556_s22, 1  ;;  %v263_v30 = vlaneseq (!%p213_p2)  ;;  %v1876_v33 = vmov (!%p213_p2), 1983009808  }
   0x6   : > { %216 = sbr.rel (%p213_p2) target bundleno = 967 (0x3c7), region = 44  ;;  %v1809_v1 = vld [vmem:[%s2246_s3] sm:$0xff] (!%p213_p2)   ;;  %1675 = vmatprep.subr.bf16.mxu0 (!%p213_p2), %v1808_v0  ;;  %v1813_v5 = vld [vmem:[%s2246_s3 + $0x8] sm:$0xff] (!%p213_p2)   ;;  %v1817_v9 = vld [vmem:[%s2246_s3 + $0x10] sm:$0xff] (!%p213_p2)   ;;  %v343_v34 = vunpack.c.l.s4 (!%p213_p2), %v1876_v33  ;;  %vm257_vm0 = vcmask (!%p213_p2), 66560   ;;  %vm259_vm1 = vcmask (!%p213_p2), 665160  }
   0x7   : > { %v1810_v2 = vld [vmem:[%s2247_s4 + $0x40] sm:$0xff] (!%p213_p2)   ;;  %1676 = vmatpush3.bf16.msra.mxu0 (!%p213_p2), %v1809_v1  ;;  %v1814_v6 = vld [vmem:[%s2247_s4 + $0x48] sm:$0xff] (!%p213_p2)   ;;  %v1818_v10 = vld [vmem:[%s2247_s4 + $0x50] sm:$0xff] (!%p213_p2)   ;;  %v346_v35 = vshrl.u32 (!%p213_p2), %v263_v30, 7  ;;  %v1877_v43 = vmov (!%p213_p2), 0.0   ;;  %s1878_s25 = smov (!%p213_p2), 9  }
   0x8   : > { %v1811_v3 = vld [vmem:[%s2247_s4] sm:$0xff] (!%p213_p2)   ;;  %1697 = vmatprep.subr.bf16.mxu1 (!%p213_p2), %v1810_v2  ;;  %1677 = vmatprep.subr.bf16.mxu0 (!%p213_p2), %v1812_v4  ;;  %v1815_v7 = vld [vmem:[%s2247_s4 + $0x8] sm:$0xff] (!%p213_p2)   ;;  %v1819_v11 = vld [vmem:[%s2247_s4 + $0x10] sm:$0xff] (!%p213_p2)   ;;  %v344_v36 = vunpack.c.0.s8 (!%p213_p2), %v343_v34  ;;  %258 = vst.msk [vmem:[#allocation3] sm:$0x3] (!%p213_p2), %vm257_vm0, %v1877_v43  ;;  %vm685_vm2 = vcmask (!%p213_p2), 590920  }
   0x9   : > { %1698 = vmatpush3.bf16.msra.mxu1 (!%p213_p2), %v1811_v3  ;;  %v1820_v12 = vld [vmem:[%s2246_s3 + $0x58] sm:$0xff] (!%p213_p2)   ;;  %v1824_v16 = vld [vmem:[%s2246_s3 + $0x60] sm:$0xff] (!%p213_p2)   ;;  %v1828_v20 = vld [vmem:[%s2246_s3 + $0x68] sm:$0xff] (!%p213_p2)   ;;  %261 = vst.msk [vmem:[#allocation4] sm:$0x3] (!%p213_p2), %vm257_vm0, %v1877_v43  ;;  %v2053_v55 = vand.u32 (!%p213_p2), 127, %v263_v30 }
   0xa   : > { %1699 = vmatprep.subr.bf16.mxu1 (!%p213_p2), %v1814_v6  ;;  %v1821_v13 = vld [vmem:[%s2246_s3 + $0x18] sm:$0xff] (!%p213_p2)   ;;  %v1825_v17 = vld [vmem:[%s2246_s3 + $0x20] sm:$0xff] (!%p213_p2)   ;;  %v1829_v21 = vld [vmem:[%s2246_s3 + $0x28] sm:$0xff] (!%p213_p2)   ;;  %v2044_v38 = vsub.s32 (!%p213_p2), %v344_v36, %v346_v35  ;;  %260 = vst.msk [vmem:[#allocation3] sm:$0x3] (!%p213_p2), %vm259_vm1, %v1877_v43  ;;  %vm726_vm4 = vcmask (!%p213_p2), 516096  }
   0xb   : > { %1678 = vmatpush3.bf16.msra.mxu0 (!%p213_p2), %v1813_v5  ;;  %v1822_v14 = vld [vmem:[%s2247_s4 + $0x58] sm:$0xff] (!%p213_p2)   ;;  %v1826_v18 = vld [vmem:[%s2247_s4 + $0x60] sm:$0xff] (!%p213_p2)   ;;  %v1830_v22 = vld [vmem:[%s2247_s4 + $0x68] sm:$0xff] (!%p213_p2)   ;;  %262 = vst.msk [vmem:[#allocation4] sm:$0x3] (!%p213_p2), %vm259_vm1, %v1877_v43  ;;  %v294_v57 = vand.u32 (!%p213_p2), 7, %v2053_v55 }
   0xc   : > { %1679 = vmatprep.subr.bf16.mxu0 (!%p213_p2), %v1816_v8  ;;  %v1823_v15 = vld [vmem:[%s2247_s4 + $0x18] sm:$0xff] (!%p213_p2)   ;;  %v1827_v19 = vld [vmem:[%s2247_s4 + $0x20] sm:$0xff] (!%p213_p2)   ;;  %v1831_v23 = vld [vmem:[%s2247_s4 + $0x28] sm:$0xff] (!%p213_p2)   ;;  %s1879_s26 = smov (!%p213_p2), 118   ;;  %s1880_s27 = smov (!%p213_p2), 126   ;;  %vm734_vm5 = vcmask (!%p213_p2), 517121  }
   0xd   : > { %1700 = vmatpush3.bf16.msra.mxu1 %v1815_v7  ;;  %v1832_v24 = vld [vmem:[%s2246_s3 + $0x70] sm:$0xff]   ;;  %s2263_s22 = smov (!%p242_p3, %s1556_s22), 1  ;;  %v1836_v28 = vld [vmem:[%s2246_s3 + $0x78] sm:$0xff]   ;;  %vm2058_vm3 = vcmp.ge.s32.totalorder %v294_v57, 1  ;;  %s1881_s28 = smov 127   ;;  %vm253_vm6 = vcmask 132096  }
   0xe   : > { %1701 = vmatprep.subr.bf16.mxu1 %v1818_v10  ;;  %v1833_v25 = vld [vmem:[%s2246_s3 + $0x30] sm:$0xff]   ;;  %v1837_v29 = vld [vmem:[%s2246_s3 + $0x38] sm:$0xff]   ;;  %s1646_s17 = sshll.u32 %s2263_s22, 2  ;;  %s1882_s29 = smov 120   ;;  %vm255_vm7 = vcmask 271496   ;;  %vm1887_vm8 = vmmov 0  }
   0xf   : > { %1680 = vmatpush3.bf16.msra.mxu0 %v1817_v9  ;;  %v1834_v26 = vld [vmem:[%s2247_s4 + $0x70] sm:$0xff]   ;;  %v1838_v31 = vld [vmem:[%s2247_s4 + $0x78] sm:$0xff]   ;;  %s246_s24 = scalar_lea.vmem %s2243_s0, %s1646_s17  ;;  %s1883_s30 = smov 111   ;;  %254 = vst.msk [vmem:[#allocation2] sm:$0x3] %vm253_vm6, %v1877_v43  ;;  %vm2082_vm9 = vcmp.le.s32.totalorder %v294_v57, 6 }
  0x10   : > { %1681 = vmatprep.subr.bf16.mxu0 %v1820_v12  ;;  %v1835_v27 = vld [vmem:[%s2247_s4 + $0x30] sm:$0xff]   ;;  %v1839_v32 = vld [vmem:[%s2247_s4 + $0x38] sm:$0xff]   ;;  %v2042_v37 = vld [vmem:[%s246_s24] sm:$0xf]  ;;  %s1884_s7 = smov 112   ;;  %s1885_s8 = smov 110  }
  0x11   : > { %1702 = vmatpush3.bf16.msra.mxu1 %v1819_v11  ;;  %v348_v39 = vrot.slane %v2042_v37, %v2044_v38  ;;  %256 = vst.msk [vmem:[#allocation2 + $0x4] sm:$0x3] %vm255_vm7, %v1877_v43  ;;  %s1886_s9 = smov 119   ;;  %s1888_s10 = smov 17   ;;  %vm875_vm10 = vcmask 519171   ;;  %vm801_vm11 = vcmask 518146  }
  0x12   : > { %1703 = vmatprep.subr.bf16.mxu1 %v1822_v14  ;;  %vm675_vm12 = vcmask 1041544   ;;  %vm676_vm13 = vcmask 1043458   ;;  %vm678_vm15 = vcmask 136196   ;;  %vm672_vm0 = vcmask 138240   ;;  %s1889_s13 = smov 96   ;;  %s1890_s14 = smov 95  }
  0x13   : > { %1682 = vmatpush3.bf16.msra.mxu0 %v1821_v13  ;;  %v349_v40 = vcombine.high %v348_v39, %v348_v39  ;;  %v350_v41 = vrot.slane %v348_v39, 1  ;;  %vm677_vm14 = vmor %vm676_vm13, %vm675_vm12  ;;  %s1891_s15 = smov 94   ;;  %vm833_vm6 = vcmask 1031168   ;;  %vm778_vm12 = vcmask 1043456   ;;  %s1647_s12 = sshll.u32 %s2263_s22, 3 }
  0x14   : > { %1683 = vmatprep.subr.bf16.mxu0 %v1824_v16  ;;  %vm679_vm1 = vmor %vm678_vm15, %vm677_vm14  ;;  %vm780_vm13 = vcmask 1039360   ;;  %vm980_vm14 = vcmask 908288   ;;  %vm1178_vm15 = vcmask 777216  }
  0x15   : > { %1704 = vmatpush3.bf16.msra.mxu1 %v1823_v15  ;;  %v351_v42 = vrot.slane %v349_v40, 1  ;;  %652 = vmatprep.mubr.bf16.mxu1 %v349_v40 }
  0x16   : > { %1705 = vmatprep.subr.bf16.mxu1 %v1826_v18 }
  0x17   : > { %1684 = vmatpush3.bf16.msra.mxu0 %v1825_v17  ;;  %482 = vmatprep.mubr.bf16.mxu0 %v351_v42 }
  0x18   : > { %1685 = vmatprep.subr.bf16.mxu0 %v1828_v20 }
  0x19   : > { %1706 = vmatpush3.bf16.msra.mxu1 %v1827_v19 }
  0x1a   : > { %1707 = vmatprep.subr.bf16.mxu1 %v1830_v22 }
  0x1b   : > { %1686 = vmatpush3.bf16.msra.mxu0 %v1829_v21 }
  0x1c   : > { %1687 = vmatprep.subr.bf16.mxu0 %v1832_v24 }
  0x1d   : > { %1708 = vmatpush3.bf16.msra.mxu1 %v1831_v23 }
  0x1e   : > { %1709 = vmatprep.subr.bf16.mxu1 %v1834_v26 }
  0x1f   : > { %1688 = vmatpush3.bf16.msra.mxu0 %v1833_v25 }
  0x20   : > { %1689 = vmatprep.subr.bf16.mxu0 %v1836_v28 }
  0x21   : > { %1710 = vmatpush3.bf16.msra.mxu1 %v1835_v27 }
  0x22   : > { %1711 = vmatprep.subr.bf16.mxu1 %v1838_v31 }
  0x23   : > { %1690 = vmatpush3.bf16.msra.mxu0 %v1837_v29 }
  0x24   : > { %1723 = vmatprep.subr.bf16.mxu0 %v1877_v43 }
  0x25   : > { %1712 = vmatpush3.bf16.msra.mxu1 %v1839_v32  ;;  %v660_v32 = vunpack.c.l.bf16 %v2042_v37 }
  0x26   : > { %483 = vmatmul.mubr.bf16.vlgmr.msra.gmra.mrb[0].mxu0 %v350_v41 }
  0x27   : > { %v668_v34 = vrot.slane %v660_v32, %v2044_v38  ;;  %1729 = vmatprep.mubr.msk.bf16.mxu0 %vm1887_vm8, %v1877_v43 }
  0x28   : > { %653 = vmatmul.mubr.bf16.vlgmr.msra.gmra.mrb[0].mxu1 %v348_v39 }
  0xf9   : > { %v1691_v46 = vpop.f32.mrb[0].mxu0 }
  0xfa   : > { %v1692_v49 = vpop.f32.mrb[1].mxu0 }
  0xfb   : > { %v1713_v44 = vpop.f32.mrb[0].mxu1  ;;  %v1693_v51 = vadd.f32 %v1692_v49, %v1691_v46  ;;  %v1694_v52 = vpop.f32.mrb[2].mxu0 }
  0xfc   : > { %v1714_v45 = vpop.f32.mrb[1].mxu1  ;;  %v1695_v53 = vpop.f32.mrb[3].mxu0 }
  0xfd   : > { %v1715_v47 = vadd.f32 %v1714_v45, %v1713_v44  ;;  %v1716_v48 = vpop.f32.mrb[2].mxu1  ;;  %682 = vrot.lane.b32.xlu0 %v1693_v51, %s1878_s25 }
  0xfe   : > { %v1717_v50 = vpop.f32.mrb[3].mxu1 }
 0x101   : > { %688 = vrot.lane.b32.xlu0 %v1715_v47, %s1878_s25 }
 0x16f   : > { %v683_v54 = vpop.permute.xlu0 %682 }
 0x170   : > { %686 = vst.msk [vmem:[#allocation3] sm:$0x3] %vm685_vm2, %v683_v54 }
 0x173   : > { %v689_v56 = vpop.permute.xlu0 %688 }
 0x174   : > { %691 = vst.msk [vmem:[#allocation4] sm:$0x3] %vm685_vm2, %v689_v56  ;;  %vm1289_vm2 = vcmask 1041408  }
 0x177   : > { %v737_v59 = vld [vmem:[#allocation3] sm:$0x3] }
 0x178   : > { %v693_v60 = vld [vmem:[#allocation3] sm:$0x3]  ;;  %v1652_v5 = vpack.c.bf16 %v737_v59, %v737_v59 }
 0x179   : > { %v1002_v61 = vld [vmem:[#allocation3] sm:$0x3]  ;;  %v714_v62 = vsel %vm2058_vm3, %v693_v60, 0.0 }
 0x17a   : > { %v804_v0 = vld [vmem:[#allocation3] sm:$0x3]  ;;  %v725_v2 = vpack.c.bf16 %v714_v62, %v714_v62  ;;  %v788_v11 = vrot.slane %v1652_v5, 7 }
 0x17b   : > { %v1003_v63 = vld [vmem:[#allocation4] sm:$0x3]  ;;  %v1136_v7 = vld [vmem:[#allocation3] sm:$0x3] }
 0x17c   : > { %v805_v1 = vld [vmem:[#allocation4] sm:$0x3]  ;;  %v1768_v3 = vpack.i.bf16 %v1003_v63, %v1002_v61  ;;  %727 = vst.msk [vmem:[#allocation6] sm:$0x1] %vm726_vm4, %v725_v2  ;;  %v878_v9 = vld [vmem:[#allocation3] sm:$0x3]  ;;  %v1671_v13 = vpack.c.bf16 %v1136_v7, %v1136_v7 }
 0x17d   : > { %v1758_v4 = vpack.i.bf16 %v805_v1, %v804_v0  ;;  %v879_v6 = vld [vmem:[#allocation4] sm:$0x3]  ;;  %v1069_v18 = vld [vmem:[#allocation3] sm:$0x3] }
 0x17e   : > { %1769 = vrot.lane.b32.xlu0 %v1768_v3, %s1879_s26  ;;  %v694_v8 = vld [vmem:[#allocation4] sm:$0x3]  ;;  %v1763_v12 = vpack.i.bf16 %v879_v6, %v878_v9  ;;  %v1186_v19 = vrot.slane %v1671_v13, 5  ;;  %v1200_v23 = vld [vmem:[#allocation3] sm:$0x3] }
 0x17f   : > { %1759 = vrot.lane.b32.xlu1 %v1758_v4, %s1880_s27  ;;  %v715_v10 = vsel %vm2058_vm3, %v694_v8, 0.0  ;;  %v1070_v15 = vld [vmem:[#allocation4] sm:$0x3]  ;;  %v940_v26 = vld [vmem:[#allocation3] sm:$0x3] }
 0x180   : > { %v1649_v14 = vpack.c.bf16 %v715_v10, %v715_v10  ;;  %v738_v16 = vld [vmem:[#allocation4] sm:$0x3]  ;;  %v1773_v20 = vpack.i.bf16 %v1070_v15, %v1069_v18  ;;  %v1661_v29 = vpack.c.bf16 %v940_v26, %v940_v26 }
 0x181   : > { %v1653_v21 = vpack.c.bf16 %v738_v16, %v738_v16  ;;  %v1201_v22 = vld [vmem:[#allocation4] sm:$0x3] }
 0x182   : > { %789 = vrot.lane.b32.xlu0 %v788_v11, %s1881_s28  ;;  %v732_v17 = vrot.slane %v1649_v14, 7  ;;  %v1778_v24 = vpack.i.bf16 %v1201_v22, %v1200_v23  ;;  %v1137_v27 = vld [vmem:[#allocation4] sm:$0x3] }
 0x183   : > { %1764 = vrot.lane.b32.xlu1 %v1763_v12, %s1882_s29  ;;  %v797_v25 = vrot.slane %v1653_v21, 6  ;;  %v941_v28 = vld [vmem:[#allocation4] sm:$0x3]  ;;  %v1672_v30 = vpack.c.bf16 %v1137_v27, %v1137_v27  ;;  %v1264_v27 = vld [vmem:[%s2245_s2] sm:$0x3] }
 0x184   : > { %735 = vst.msk [vmem:[#allocation6 + $0x8] sm:$0x2] %vm734_vm5, %v732_v17  ;;  %v1662_v31 = vpack.c.bf16 %v941_v28, %v941_v28 }
 0x186   : > { %1187 = vrot.lane.b32.xlu0 %v1186_v19, %s1883_s30  ;;  %v996_v33 = vrot.slane %v1662_v31, 7 }
 0x187   : > { %1774 = vrot.lane.b32.xlu1 %v1773_v20, %s1884_s7 }
 0x18a   : > { %798 = vrot.lane.b32.xlu0 %v797_v25, %s1881_s28 }
 0x18b   : > { %1779 = vrot.lane.b32.xlu1 %v1778_v24, %s1885_s8 }
 0x18e   : > { %1195 = vrot.lane.b32.xlu0 %v1672_v30, %s1883_s30 }
 0x18f   : > { %988 = vrot.lane.b32.xlu1 %v1661_v29, %s1886_s9 }
 0x193   : > { %997 = vrot.lane.b32.xlu1 %v996_v33, %s1886_s9 }
 0x197   : > { %669 = vrot.lane.b32.xlu1 %v668_v34, %s1888_s10 }
 0x1f0   : > { %v1770_v36 = vpop.permute.xlu0 %1769 }
 0x1f1   : > { %v1760_v39 = vpop.permute.xlu1 %1759  ;;  %v1772_v40 = vunpack.i.h.bf16 %v1770_v36  ;;  %v1771_v41 = vunpack.i.l.bf16 %v1770_v36 }
 0x1f2   : > { %v1762_v37 = vunpack.i.h.bf16 %v1760_v39  ;;  %v1761_v42 = vunpack.i.l.bf16 %v1760_v39 }
 0x1f3   : > { %v1043_v44 = vsel %vm2082_vm9, %v1772_v40, 0.0  ;;  %v1038_v45 = vsel %vm2082_vm9, %v1771_v41, 0.0 }
 0x1f4   : > { %v851_v46 = vsel %vm2082_vm9, %v1762_v37, 0.0  ;;  %v846_v47 = vsel %vm2082_vm9, %v1761_v42, 0.0  ;;  %v1665_v48 = vpack.c.bf16 %v1043_v44, %v1043_v44  ;;  %v1664_v49 = vpack.c.bf16 %v1038_v45, %v1038_v45  ;;  %v790_v52 = vpop.permute.xlu0 %789 }
 0x1f5   : > { %v1656_v50 = vpack.c.bf16 %v851_v46, %v851_v46  ;;  %v1655_v51 = vpack.c.bf16 %v846_v47, %v846_v47  ;;  %v1765_v53 = vpop.permute.xlu1 %1764  ;;  %792 = vst.msk [vmem:[#allocation6] sm:$0x2] %vm734_vm5, %v790_v52  ;;  %v270_v42 = vand.u32 15, %v2053_v55 }
 0x1f6   : > { %v1767_v54 = vunpack.i.h.bf16 %v1765_v53  ;;  %v1766_v56 = vunpack.i.l.bf16 %v1765_v53  ;;  %v1065_v57 = vrot.slane %v1665_v48, 6  ;;  %v1058_v59 = vrot.slane %v1664_v49, 7 }
 0x1f7   : > { %v873_v60 = vrot.slane %v1656_v50, 5  ;;  %v866_v61 = vrot.slane %v1655_v51, 6  ;;  %vm2198_vm7 = vcmp.le.s32.totalorder %v270_v42, 14 }
 0x1f8   : > { %v919_v62 = vsel %vm2058_vm3, %v1767_v54, 0.0  ;;  %v914_v63 = vsel %vm2058_vm3, %v1766_v56, 0.0  ;;  %1060 = vst.msk [vmem:[#allocation6 + $0x4] sm:$0x2] %vm734_vm5, %v1058_v59  ;;  %v1188_v2 = vpop.permute.xlu0 %1187 }
 0x1f9   : > { %v937_v0 = vpack.c.bf16 %v919_v62, %v919_v62  ;;  %v1658_v1 = vpack.c.bf16 %v914_v63, %v914_v63  ;;  %876 = vst.msk [vmem:[#allocation6 + $0x8] sm:$0x8] %vm875_vm10, %v873_v60  ;;  %v1775_v3 = vpop.permute.xlu1 %1774  ;;  %1190 = vst.msk [vmem:[#allocation6 + $0x4] sm:$0x8] %vm875_vm10, %v1188_v2 }
 0x1fa   : > { %868 = vst.msk [vmem:[#allocation6] sm:$0x4] %vm801_vm11, %v866_v61  ;;  %1067 = vst.msk [vmem:[#allocation6 + $0xc] sm:$0x4] %vm801_vm11, %v1065_v57  ;;  %v1777_v4 = vunpack.i.h.bf16 %v1775_v3  ;;  %v1776_v5 = vunpack.i.l.bf16 %v1775_v3 }
 0x1fb   : > { %938 = vst.msk [vmem:[#allocation6 + $0xc] sm:$0x1] %vm726_vm4, %v937_v0  ;;  %v934_v6 = vrot.slane %v1658_v1, 5 }
 0x1fc   : > { %v1110_v7 = vsel %vm2058_vm3, %v1777_v4, 0.0  ;;  %v1105_v8 = vsel %vm2058_vm3, %v1776_v5, 0.0  ;;  %v799_v12 = vpop.permute.xlu0 %798  ;;  %vm1285_vm3 = vcmask 293888  }
 0x1fd   : > { %936 = vst.msk [vmem:[#allocation6] sm:$0x8] %vm875_vm10, %v934_v6  ;;  %v1668_v9 = vpack.c.bf16 %v1110_v7, %v1110_v7  ;;  %v1667_v10 = vpack.c.bf16 %v1105_v8, %v1105_v8  ;;  %v1780_v11 = vpop.permute.xlu1 %1779 }
 0x1fe   : > { %v1781_v13 = vunpack.i.l.bf16 %v1780_v11  ;;  %802 = vst.msk [vmem:[#allocation6 + $0x8] sm:$0x4] %vm801_vm11, %v799_v12 }
 0x1ff   : > { %v1132_v14 = vrot.slane %v1668_v9, 5  ;;  %v1125_v15 = vrot.slane %v1667_v10, 6 }
 0x200   : > { %v1236_v16 = vsel %vm2082_vm9, %v1781_v13, 0.0  ;;  %v1196_v18 = vpop.permute.xlu0 %1195  ;;  %vm903_vm9 = vcmask 916480  }
 0x201   : > { %1134 = vst.msk [vmem:[#allocation6 + $0xc] sm:$0x8] %vm875_vm10, %v1132_v14  ;;  %v1251_v17 = vpack.c.bf16 %v1236_v16, %v1236_v16  ;;  %v989_v58 = vpop.permute.xlu1 %988  ;;  %vm1027_vm10 = vcmask 900096  }
 0x202   : > { %1127 = vst.msk [vmem:[#allocation6 + $0x4] sm:$0x4] %vm801_vm11, %v1125_v15  ;;  %vm1094_vm11 = vcmask 785408  }
 0x203   : > { %991 = vst.msk [vmem:[#allocation6 + $0x4] sm:$0x1] %vm726_vm4, %v989_v58  ;;  %1198 = vst.msk [vmem:[#allocation6 + $0x10] sm:$0x1] %vm726_vm4, %v1196_v18 }
 0x204   : > { %1252 = vst.msk [vmem:[#allocation6 + $0x8] sm:$0x1] %vm726_vm4, %v1251_v17  ;;  %vm2144_vm4 = vcmp.ge.s32.totalorder %v270_v42, 1 }
 0x205   : > { %v998_v19 = vpop.permute.xlu1 %997 }
 0x206   : > { %1000 = vst.msk [vmem:[#allocation6 + $0xc] sm:$0x2] %vm734_vm5, %v998_v19 }
 0x209   : > { %v670_v20 = vpop.permute.xlu1 %669 }
 0x20a   : > { %v1840_v21 = vld [vmem:[#allocation6] sm:$0xff]   ;;  %v671_v22 = vrot.slane %v670_v20, 6  ;;  %v1842_v25 = vld [vmem:[#allocation6 + $0x10] ss:$0 sps:$4 sm:$0x33]  }
 0x20b   : > { %1724 = vmatpush3.bf16.msra.mxu0 %v1840_v21  ;;  %v1291_v26 = vsel %vm1289_vm2, %v1842_v25, 0 }
 0x20c   : > { %v673_v23 = vsel %vm672_vm0, %v671_v22, %v670_v20  ;;  %1725 = vmatprep.subr.bf16.mxu0 %v1877_v43  ;;  %vm1225_vm0 = vcmask 769024  }
 0x20d   : > { %680 = vst.msk [vmem:[#allocation2] sm:$0x3f] %vm679_vm1, %v673_v23  ;;  %v1841_v24 = vld [vmem:[#allocation6 + $0x8] sm:$0xff]   ;;  %vm1446_vm1 = vcmask 1040384  }
 0x20f   : > { %1726 = vmatpush3.bf16.msra.mxu0 %v1841_v24 }
 0x210   : > { %1727 = vmatprep.subr.bf16.mxu0 %v1877_v43  ;;  %v2128_v43 = vadd.s32 128, %v2053_v55 }
 0x212   : > { %v277_v52 = vand.u32 15, %v2128_v43 }
 0x213   : > { %1728 = vmatpush3.bf16.msra.mxu0 %v1291_v26 }
 0x214   : > { %v803_v28 = vld [vmem:[#allocation2] sm:$0x3f]  ;;  %vm2151_vm5 = vcmp.ge.s32.totalorder %v277_v52, 1  ;;  %vm2204_vm8 = vcmp.le.s32.totalorder %v277_v52, 14 }
 0x215   : > { %v877_v29 = vld [vmem:[#allocation2] sm:$0x3f]  ;;  %v811_v31 = vcombine.high %v803_v28, %v803_v28  ;;  %v818_v32 = vrot.slane %v803_v28, %v2044_v38 }
 0x216   : > { %v1001_v30 = vld [vmem:[#allocation2] sm:$0x3f]  ;;  %v881_v33 = vcombine.high %v877_v29, %v877_v29  ;;  %v888_v34 = vrot.slane %v877_v29, %v2044_v38  ;;  %1730 = vmatmul.mubr.msk.bf16.vlgmr.msra.gmra.mrb[4].mxu0 %vm1285_vm3, %v1264_v27  ;;  %vm1442_vm3 = vcmask 146432  }
 0x217   : > { %v736_v35 = vld [vmem:[#allocation2] sm:$0x3f]  ;;  %v825_v36 = vrot.slane %v811_v31, %v2044_v38  ;;  %v826_v39 = vcombine.high %v818_v32, %v818_v32  ;;  %v1012_v41 = vrot.slane %v1001_v30, %v2044_v38  ;;  %v1005_v46 = vcombine.high %v1001_v30, %v1001_v30 }
 0x218   : > { %v896_v40 = vcombine.high %v888_v34, %v888_v34  ;;  %v1068_v37 = vld [vmem:[#allocation2] sm:$0x3f]  ;;  %v895_v45 = vrot.slane %v881_v33, %v2044_v38  ;;  %v740_v47 = vcombine.high %v736_v35, %v736_v35  ;;  %v747_v51 = vrot.slane %v736_v35, %v2044_v38  ;;  %v1861_v33 = vld [vmem:[%s2248_s5 + $0x14] ss:$8 sps:$4 sm:$0xff]  }
 0x219   : > { %831 = vrot.lane.b32.xlu1 %v825_v36, %s1880_s27  ;;  %v1783_v44 = vpack.i.bf16 %v826_v39, %v818_v32  ;;  %v1079_v48 = vrot.slane %v1068_v37, %v2044_v38  ;;  %v1020_v50 = vcombine.high %v1012_v41, %v1012_v41  ;;  %v1019_v53 = vrot.slane %v1005_v46, %v2044_v38  ;;  %v1597_v59 = vld.sshfl [vmem:[#allocation2] sm:$0x33 pattern:$0x76325410]  ;;  %v1858_v32 = vld [vmem:[%s2248_s5 + $0x4] ss:$8 sps:$4 sm:$0xff]  }
 0x21a   : > { %v1788_v49 = vpack.i.bf16 %v896_v40, %v888_v34  ;;  %v1072_v54 = vcombine.high %v1068_v37, %v1068_v37  ;;  %v754_v56 = vrot.slane %v740_v47, %v2044_v38  ;;  %v939_v61 = vld [vmem:[#allocation2] sm:$0x3f]  ;;  %v755_v0 = vcombine.high %v747_v51, %v747_v51  ;;  %1386 = vmatprep.subr.bf16.mxu1 %v1858_v32  ;;  %v1867_v39 = vld [vmem:[%s2248_s5 + $0x34] ss:$8 sps:$4 sm:$0xff]   ;;  %v1865_v40 = vld [vmem:[%s2248_s5 + $0x30] ss:$8 sps:$4 sm:$0xff]  }
 0x21b   : > { %1784 = vrot.lane.b32.xlu0 %v1783_v44, %s1880_s27  ;;  %v1087_v60 = vcombine.high %v1079_v48, %v1079_v48  ;;  %v1135_v62 = vld [vmem:[#allocation2] sm:$0x3f]  ;;  %v1793_v63 = vpack.i.bf16 %v1020_v50, %v1012_v41  ;;  %v707_v2 = vcombine.high %v1597_v59, %v1597_v59  ;;  %v710_v3 = vsel %vm2144_vm4, %v1597_v59, 0.0 }
 0x21c   : > { %v1086_v4 = vrot.slane %v1072_v54, %v2044_v38  ;;  %v1651_v5 = vpack.c.bf16 %v754_v56, %v754_v56  ;;  %v943_v6 = vcombine.high %v939_v61, %v939_v61  ;;  %v1139_v7 = vcombine.high %v1135_v62, %v1135_v62  ;;  %v1199_v19 = vld [vmem:[#allocation2] sm:$0x3f] }
 0x21d   : > { %901 = vrot.lane.b32.xlu1 %v895_v45, %s1884_s7  ;;  %v1798_v8 = vpack.i.bf16 %v1087_v60, %v1079_v48  ;;  %v711_v9 = vsel %vm2151_vm5, %v707_v2, 0.0  ;;  %v1650_v10 = vpack.c.bf16 %v755_v0, %v747_v51  ;;  %v950_v11 = vrot.slane %v939_v61, %v2044_v38  ;;  %v1856_v31 = vld [vmem:[%s2248_s5] ss:$8 sps:$4 sm:$0xff]   ;;  %v1864_v35 = vld [vmem:[%s2248_s5 + $0x24] ss:$8 sps:$4 sm:$0xff]  }
 0x21e   : > { %v1146_v12 = vrot.slane %v1135_v62, %v2044_v38  ;;  %v1648_v13 = vpack.c.bf16 %v711_v9, %v710_v3  ;;  %v771_v14 = vrot.slane %v1651_v5, 7  ;;  %v957_v15 = vrot.slane %v943_v6, %v2044_v38  ;;  %1387 = vmatpush1.bf16.msra.mxu1 %v1856_v31  ;;  %v1862_v36 = vld [vmem:[%s2248_s5 + $0x20] ss:$8 sps:$4 sm:$0xff]  }
 0x21f   : > { %1789 = vrot.lane.b32.xlu0 %v1788_v49, %s1884_s7  ;;  %v1153_v16 = vrot.slane %v1139_v7, %v2044_v38  ;;  %v770_v17 = vrot.slane %v1650_v10, 7  ;;  %v958_v58 = vcombine.high %v950_v11, %v950_v11  ;;  %v1210_v24 = vrot.slane %v1199_v19, %v2044_v38  ;;  %1388 = vmatprep.subr.bf16.mxu1 %v1861_v33  ;;  %v1260_v44 = vld [vmem:[%s2244_s1] sm:$0x1] }
 0x220   : > { %724 = vst [vmem:[#allocation5] sm:$0x11] %v1648_v13  ;;  %v1154_v18 = vcombine.high %v1146_v12, %v1146_v12  ;;  %v1660_v20 = vpack.c.bf16 %v957_v15, %v957_v15  ;;  %v1203_v26 = vcombine.high %v1199_v19, %v1199_v19  ;;  %v1892_v34 = vmov 0  }
 0x221   : > { %1025 = vrot.lane.b32.xlu1 %v1019_v53, %s1885_s8  ;;  %v1670_v21 = vpack.c.bf16 %v1153_v16, %v1153_v16  ;;  %v1659_v22 = vpack.c.bf16 %v958_v58, %v950_v11  ;;  %v1218_v28 = vcombine.high %v1210_v24, %v1210_v24  ;;  %1485 = vmatprep.mubr.bf16.mxu0 %v1892_v34 }
 0x222   : > { %v1669_v23 = vpack.c.bf16 %v1154_v18, %v1146_v12  ;;  %v1217_v29 = vrot.slane %v1203_v26, %v2044_v38  ;;  %v1859_v38 = vld [vmem:[%s2248_s5 + $0x10] ss:$8 sps:$4 sm:$0xff]   ;;  %1418 = vmatprep.mubr.bf16.mxu1 %v1892_v34 }
 0x223   : > { %1794 = vrot.lane.b32.xlu0 %v1793_v63, %s1885_s8  ;;  %v1170_v25 = vrot.slane %v1670_v21, 5  ;;  %v1803_v30 = vpack.i.bf16 %v1218_v28, %v1210_v24  ;;  %1389 = vmatpush1.bf16.msra.mxu1 %v1859_v38 }
 0x224   : > { %v1169_v27 = vrot.slane %v1669_v23, 5  ;;  %1390 = vmatprep.subr.bf16.mxu1 %v1864_v35 }
 0x225   : > { %1092 = vrot.lane.b32.xlu1 %v1086_v4, %s1889_s13 }
 0x227   : > { %1799 = vrot.lane.b32.xlu0 %v1798_v8, %s1889_s13  ;;  %1391 = vmatpush1.bf16.msra.mxu1 %v1862_v36 }
 0x228   : > { %1392 = vmatprep.subr.bf16.mxu1 %v1867_v39 }
 0x229   : > { %774 = vrot.lane.b32.xlu1 %v771_v14, %s1881_s28 }
 0x22b   : > { %772 = vrot.lane.b32.xlu0 %v770_v17, %s1881_s28  ;;  %1393 = vmatpush1.bf16.msra.mxu1 %v1865_v40 }
 0x22d   : > { %975 = vrot.lane.b32.xlu1 %v1660_v20, %s1883_s30 }
 0x22f   : > { %973 = vrot.lane.b32.xlu0 %v1659_v22, %s1883_s30 }
 0x231   : > { %1173 = vrot.lane.b32.xlu1 %v1170_v25, %s1890_s14 }
 0x233   : > { %1171 = vrot.lane.b32.xlu0 %v1169_v27, %s1890_s14 }
 0x235   : > { %1223 = vrot.lane.b32.xlu1 %v1217_v29, %s1891_s15 }
 0x237   : > { %1804 = vrot.lane.b32.xlu0 %v1803_v30, %s1891_s15  ;;  %s251_s15 = scalar_lea.vmem %s2249_s6, %s1647_s12 }
 0x28b   : > { %v832_v41 = vpop.permute.xlu1 %831 }
 0x28d   : > { %v1785_v37 = vpop.permute.xlu0 %1784 }
 0x28e   : > { %v1787_v46 = vunpack.i.h.bf16 %v1785_v37  ;;  %v1786_v47 = vunpack.i.l.bf16 %v1785_v37 }
 0x28f   : > { %v902_v48 = vpop.permute.xlu1 %901 }
 0x290   : > { %v835_v49 = vsel %vm833_vm6, %v1787_v46, %v832_v41  ;;  %v834_v50 = vsel %vm833_vm6, %v1786_v47, %v1787_v46 }
 0x291   : > { %v839_v51 = vsel %vm2204_vm8, %v835_v49, 0.0  ;;  %v838_v55 = vsel %vm2198_vm7, %v834_v50, 0.0  ;;  %v1790_v42 = vpop.permute.xlu0 %1789 }
 0x292   : > { %v1654_v53 = vpack.c.bf16 %v839_v51, %v838_v55  ;;  %v1792_v54 = vunpack.i.h.bf16 %v1790_v42  ;;  %v1791_v43 = vunpack.i.l.bf16 %v1790_v42 }
 0x293   : > { %v1026_v52 = vpop.permute.xlu1 %1025 }
 0x294   : > { %v859_v56 = vrot.slane %v1654_v53, 6  ;;  %v905_v59 = vsel %vm903_vm9, %v1792_v54, %v902_v48  ;;  %v904_v60 = vsel %vm903_vm9, %v1791_v43, %v1792_v54 }
 0x295   : > { %v909_v61 = vsel %vm2151_vm5, %v905_v59, 0.0  ;;  %v908_v62 = vsel %vm2144_vm4, %v904_v60, 0.0  ;;  %v1795_v63 = vpop.permute.xlu0 %1794 }
 0x296   : > { %861 = vst [vmem:[#allocation5] sm:$0x44] %v859_v56  ;;  %v1657_v0 = vpack.c.bf16 %v909_v61, %v908_v62  ;;  %v1797_v2 = vunpack.i.h.bf16 %v1795_v63  ;;  %v1796_v3 = vunpack.i.l.bf16 %v1795_v63 }
 0x297   : > { %v1093_v4 = vpop.permute.xlu1 %1092 }
 0x298   : > { %v927_v5 = vrot.slane %v1657_v0, 5  ;;  %v1029_v6 = vsel %vm1027_vm10, %v1797_v2, %v1026_v52  ;;  %v1028_v7 = vsel %vm1027_vm10, %v1796_v3, %v1797_v2 }
 0x299   : > { %v1033_v8 = vsel %vm2204_vm8, %v1029_v6, 0.0  ;;  %v1032_v9 = vsel %vm2198_vm7, %v1028_v7, 0.0  ;;  %v1800_v10 = vpop.permute.xlu0 %1799 }
 0x29a   : > { %929 = vst [vmem:[#allocation5] sm:$0x88] %v927_v5  ;;  %v1663_v11 = vpack.c.bf16 %v1033_v8, %v1032_v9  ;;  %v1802_v12 = vunpack.i.h.bf16 %v1800_v10  ;;  %v1801_v13 = vunpack.i.l.bf16 %v1800_v10 }
 0x29b   : > { %v775_v14 = vpop.permute.xlu1 %774 }
 0x29c   : > { %v1051_v15 = vrot.slane %v1663_v11, 7  ;;  %v1096_v16 = vsel %vm1094_vm11, %v1802_v12, %v1093_v4  ;;  %v1095_v17 = vsel %vm1094_vm11, %v1801_v13, %v1802_v12  ;;  %v777_v58 = vrot.slane %v775_v14, 4 }
 0x29d   : > { %v1100_v18 = vsel %vm2151_vm5, %v1096_v16, 0.0  ;;  %v1099_v19 = vsel %vm2144_vm4, %v1095_v17, 0.0  ;;  %v773_v20 = vpop.permute.xlu0 %772  ;;  %vm1382_vm4 = vcmask 523264  }
 0x29e   : > { %1053 = vst [vmem:[#allocation5 + $0x8] sm:$0x22] %v1051_v15  ;;  %v1666_v21 = vpack.c.bf16 %v1100_v18, %v1099_v19  ;;  %v776_v22 = vrot.slane %v773_v20, 4 }
 0x29f   : > { %v976_v23 = vpop.permute.xlu1 %975 }
 0x2a0   : > { %v1118_v24 = vrot.slane %v1666_v21, 6  ;;  %v779_v25 = vsel %vm778_vm12, %v776_v22, %v777_v58  ;;  %v978_v26 = vrot.slane %v976_v23, 4 }
 0x2a1   : > { %v781_v27 = vsel %vm780_vm13, %v773_v20, %v779_v25  ;;  %v974_v28 = vpop.permute.xlu0 %973 }
 0x2a2   : > { %1120 = vst [vmem:[#allocation5 + $0x8] sm:$0x44] %v1118_v24  ;;  %783 = vst [vmem:[#allocation5] sm:$0x22] %v781_v27  ;;  %v977_v1 = vrot.slane %v974_v28, 4 }
 0x2a3   : > { %v1174_v29 = vpop.permute.xlu1 %1173 }
 0x2a4   : > { %v979_v57 = vsel %vm778_vm12, %v977_v1, %v978_v26  ;;  %v1176_v30 = vrot.slane %v1174_v29, 4 }
 0x2a5   : > { %v981_v31 = vsel %vm980_vm14, %v974_v28, %v979_v57  ;;  %v1172_v32 = vpop.permute.xlu0 %1171 }
 0x2a6   : > { %983 = vst [vmem:[#allocation5 + $0x8] sm:$0x11] %v981_v31  ;;  %v1175_v33 = vrot.slane %v1172_v32, 4 }
 0x2a7   : > { %v1224_v36 = vpop.permute.xlu1 %1223 }
 0x2a8   : > { %v1177_v38 = vsel %vm778_vm12, %v1175_v33, %v1176_v30 }
 0x2a9   : > { %v1179_v34 = vsel %vm1178_vm15, %v1172_v32, %v1177_v38  ;;  %v1805_v35 = vpop.permute.xlu0 %1804 }
 0x2aa   : > { %1181 = vst [vmem:[#allocation5 + $0x8] sm:$0x88] %v1179_v34  ;;  %v1807_v39 = vunpack.i.h.bf16 %v1805_v35  ;;  %v1806_v40 = vunpack.i.l.bf16 %v1805_v35 }
 0x2ac   : > { %v1226_v41 = vsel %vm1225_vm0, %v1806_v40, %v1807_v39  ;;  %v1227_v37 = vsel %vm1225_vm0, %v1807_v39, %v1224_v36 }
 0x2ad   : > { %v1230_v46 = vsel %vm2198_vm7, %v1226_v41, 0.0  ;;  %v1231_v47 = vsel %vm2204_vm8, %v1227_v37, 0.0 }
 0x2ae   : > { %v1673_v48 = vpack.c.bf16 %v1231_v47, %v1230_v46 }
 0x2b0   : > { %1250 = vst [vmem:[#allocation5 + $0x10] sm:$0x11] %v1673_v48 }
 0x2b1   : > { %v1851_v49 = vld [vmem:[#allocation5] ss:$8 sps:$4 sm:$0xff]   ;;  %v1853_v50 = vld [vmem:[#allocation5 + $0x4] ss:$8 sps:$4 sm:$0xff]  }
 0x2b2   : > { %1453 = vmatprep.subr.bf16.mxu0 %v1853_v50 }
 0x2b3   : > { %1454 = vmatpush1.bf16.msra.mxu0 %v1851_v49 }
 0x2b7   : > { %v1263_v51 = vld [vmem:[#allocation5 + $0x10] sm:$0x11] }
 0x2b8   : > { %v1641_v55 = vcombine.high %v1263_v51, %v1263_v51  ;;  %v1640_v42 = vcombine.low %v1263_v51, %v1263_v51 }
 0x2ba   : > { %1642 = vmatprep.subr.msk.bf16.mxu0 %vm1446_vm1, %v1641_v55  ;;  %v1448_v53 = vsel %vm1446_vm1, %v1640_v42, 0 }
 0x2bb   : > { %1456 = vmatpush1.bf16.msra.mxu0 %v1448_v53 }
 0x2be   : > { %1643 = vmatmul.mubr.msk.bf16.vlgmr.msra.gmra.mrb[8].mxu0 %vm1442_vm3, %v1260_v44 }
 0x2e9   : > { %v1327_v45 = vpop.f32.mrb[4].mxu0 }
 0x2ea   : > { %v1333_v54 = vpack.c.bf16 %v1327_v45, %v1327_v45  ;;  %v1731_v43 = vpop.f32.mrb[5].mxu0 }
 0x2eb   : > { %v1330_v52 = vpop.f32.mrb[6].mxu0 }
 0x2ec   : > { %v1732_v56 = vpop.f32.mrb[7].mxu0  ;;  %1637 = vmatmul.mubr.msk.bf16.vlgmr.msra.gmra.mrb[4].mxu1 %vm1382_vm4, %v1333_v54 }
 0x391   : > { %v1487_v59 = vpop.f32.mrb[8].mxu0 }
 0x392   : > { %v1489_v60 = vpop.f32.mrb[9].mxu0 }
 0x393   : > { %v1491_v61 = vpop.f32.mrb[10].mxu0 }
 0x394   : > { %v1492_v62 = vpop.f32.mrb[11].mxu0 }
 0x3bf   : > { %v1420_v63 = vpop.f32.mrb[4].mxu1 }
 0x3c0   : > { %v1488_v0 = vadd.f32 %v1487_v59, %v1420_v63  ;;  %v1422_v2 = vpop.f32.mrb[5].mxu1 }
 0x3c1   : > { %v1490_v3 = vadd.f32 %v1489_v60, %v1422_v2  ;;  %v1424_v4 = vpop.f32.mrb[6].mxu1 }
 0x3c2   : > { %v1494_v5 = vsel %vm1289_vm2, %v1488_v0, %v1420_v63  ;;  %v1425_v6 = vpop.f32.mrb[7].mxu1 }
 0x3c3   : > { %v1495_v7 = vsel %vm1289_vm2, %v1490_v3, %v1422_v2 }
 0x3c4   : > { %v1498_v8 = vcombine.low %v1494_v5, %v1495_v7 }
 0x3c6   : > { %1500 = vst [vmem:[%s251_s15] sm:$0xff] %v1498_v8 }
 0x3c7 PF: > { %s16_s21 = sadd.s32 1, %s1874_s21  }
 0x3c8   : > { %p13_p4 = scmp.ge.s32.totalorder %s16_s21, 4  }
 0x3ca   :  { %15 = sbr.rel (!%p13_p4) target bundleno = 1 (0x1), region = 74 }

</bundles_post_ra>
